<compile_context>
chip_gen: v7x
topology: tpu7x:2x2x1
jax: 0.10.0
libtpu: 0.0.40
codegen_flags: <defaults>
</compile_context>

<pallas_src>
import jax
import jax.numpy as jnp
from jax import lax
from jax.experimental import pallas as pl
from jax.experimental.pallas import tpu as pltpu


def null_phrase_layer(embs, mask):
    """Faithful NullPhraseLayer.forward: does nothing, returns None."""
    # TODO(synk): NullPhraseLayer has no computation; nothing to lower to Pallas.
    del embs, mask
    return None


def _pooled_classifier_kernel(sent_ref, mask_ref, w_ref, b_ref, out_ref,
                              acc_ref, den_ref):
    # sent_ref: (tb, ts, H) f32   mask_ref: (tb, 1, ts) f32
    # w_ref:    (H, Cp)     f32   b_ref:    (1, Cp)     f32
    # out_ref:  (tb, Cp)    f32
    # acc_ref:  (tb, 1, H)  f32 scratch    den_ref: (tb, 1, 1) f32 scratch
    j = pl.program_id(1)

    @pl.when(j == 0)
    def _init():
        acc_ref[...] = jnp.zeros_like(acc_ref)
        den_ref[...] = jnp.zeros_like(den_ref)

    sent = sent_ref[...]
    mask = mask_ref[...]

    # Masked sum over this sequence block as a batched (M=1) matmul on the MXU:
    #   pooled[b, 0, h] = sum_s mask[b, 0, s] * sent[b, s, h]
    # This replaces the (tb, ts, H) elementwise temporary + sublane reduction.
    pooled = lax.dot_general(
        mask, sent,
        dimension_numbers=(((2,), (1,)), ((0,), (0,))),
        preferred_element_type=jnp.float32)                    # (tb, 1, H)
    acc_ref[...] += pooled
    den_ref[...] += jnp.sum(mask, axis=2, keepdims=True)       # (tb, 1, 1)

    @pl.when(j == pl.num_programs(1) - 1)
    def _finalize():
        emb = acc_ref[:, 0, :]                                  # (tb, H)
        inv = pl.reciprocal(jnp.maximum(den_ref[:, 0, :], 1e-9),
                            approx=True)                        # (tb, 1) on EUP
        emb = emb * inv
        logits = jnp.dot(emb, w_ref[...],
                         preferred_element_type=jnp.float32)    # (tb, Cp)
        out_ref[...] = logits + b_ref[...]                      # lane-dense store


def _choose_tiles(B, S, H, itemsize, sent_block_budget=2 * 1024 * 1024):
    """Pick (tb, ts): batch tile a sublane multiple, seq tile a lane multiple,
    and keep each streamed embs block <= ~2 MiB so (2 inputs x 2 buffers) stays
    well inside v7x's scoped-VMEM default (and trivially within v5e/v6e)."""
    tb = 8 if B % 8 == 0 else B
    if S % 128 == 0:
        ts = 128
        while S % (ts * 2) == 0 and tb * (ts * 2) * H * itemsize <= sent_block_budget:
            ts *= 2
    else:
        ts = S
    return tb, ts


def pooled_classifier(sent, mask, weight, bias):
    """Masked mean-pool over the sequence axis followed by Linear(H -> C).

    sent:  (B, S, H) activations
    mask:  (B, S)    1.0 = valid token, 0.0 = padding
    weight:(C, H)    PyTorch Linear convention
    bias:  (C,)
    Returns logits (B, C) float32.
    """
    B, S, H = sent.shape
    C = weight.shape[0]
    Cp = ((C + 127) // 128) * 128              # lane-dense output width

    sent = sent.astype(jnp.float32)
    mask3 = mask.astype(jnp.float32).reshape(B, 1, S)

    # Lane-dense classifier params: zero-pad the class dim up to Cp (wrapper-side
    # layout plumbing; padded columns contribute zeros and are sliced off below).
    w_t = jnp.zeros((H, Cp), jnp.float32).at[:, :C].set(
        jnp.transpose(weight).astype(jnp.float32))
    b2d = jnp.zeros((1, Cp), jnp.float32).at[:, :C].set(bias.astype(jnp.float32))

    tb, ts = _choose_tiles(B, S, H, 4)
    grid = (B // tb, S // ts)

    cost = pl.CostEstimate(
        flops=2 * B * S * H + 2 * B * H * Cp,
        transcendentals=B,
        bytes_accessed=4 * (B * S * H + B * S + H * Cp + Cp + B * Cp),
    )

    logits_padded = pl.pallas_call(
        _pooled_classifier_kernel,
        out_shape=jax.ShapeDtypeStruct((B, Cp), jnp.float32),
        grid_spec=pltpu.PrefetchScalarGridSpec(
            num_scalar_prefetch=0,
            grid=grid,
            in_specs=[
                pl.BlockSpec((tb, ts, H), lambda i, j: (i, j, 0)),   # embs block
                pl.BlockSpec((tb, 1, ts), lambda i, j: (i, 0, j)),   # mask block
                pl.BlockSpec((H, Cp), lambda i, j: (0, 0)),          # weight^T (resident)
                pl.BlockSpec((1, Cp), lambda i, j: (0, 0)),          # bias (resident)
            ],
            out_specs=pl.BlockSpec((tb, Cp), lambda i, j: (i, 0)),   # accumulator output
            scratch_shapes=[
                pltpu.VMEM((tb, 1, H), jnp.float32),   # running masked sum
                pltpu.VMEM((tb, 1, 1), jnp.float32),   # running valid-token count
            ],
        ),
        compiler_params=pltpu.CompilerParams(
            dimension_semantics=("parallel", "arbitrary"),
        ),
        cost_estimate=cost,
    )(sent, mask3, w_t, b2d)

    return logits_padded[:, :C]


def _reference(sent, mask, weight, bias):
    masked = sent * mask[:, :, None]
    emb = masked.sum(axis=1) / jnp.maximum(mask.sum(axis=1, keepdims=True), 1e-9)
    return emb @ weight.T + bias


if __name__ == "__main__":
    # Shapes chosen to exercise the 2-D grid (batch tiling + sequence reduction)
    # while staying small: grid = (16/8, 512/256) = (2, 2), embs = 8 MiB total.
    B, S, H, C = 16, 512, 256, 4

    key = jax.random.PRNGKey(0)
    k_sent, k_w, k_b = jax.random.split(key, 3)

    sent = jax.random.normal(k_sent, (B, S, H), dtype=jnp.float32)
    # Deterministic ragged mask: row b keeps min(37*(b+1), S) tokens.
    lengths = jnp.minimum(37 * (jnp.arange(B, dtype=jnp.int32) + 1), S)
    mask = (jnp.arange(S)[None, :] < lengths[:, None]).astype(jnp.float32)

    # Deterministic synthetic classifier parameters (PyTorch Linear layout).
    weight = 0.1 * jax.random.normal(k_w, (C, H), dtype=jnp.float32)
    bias = 0.01 * jax.random.normal(k_b, (C,), dtype=jnp.float32)

    # Faithful module semantics: NullPhraseLayer.forward returns None.
    assert null_phrase_layer(sent, mask) is None

    logits = pooled_classifier(sent, mask, weight, bias)
    logits = jax.block_until_ready(logits)

    ref = _reference(sent, mask, weight, bias)
    assert logits.shape == (B, C)
    # Tolerance loosened for the approx (EUP) reciprocal in the pooling denom.
    assert jnp.allclose(logits, ref, atol=1e-2, rtol=1e-2), "mismatch vs reference"

    print("KERNEL_OK")
</pallas_src>

<mosaic_0001>
module attributes {stable_mosaic.version = 11 : i64} {
  func.func @_pooled_classifier_kernel(%arg0: i32, %arg1: i32, %arg2: memref<8x256x256xf32, #tpu.memory_space<vmem>>, %arg3: memref<8x1x256xf32, #tpu.memory_space<vmem>>, %arg4: memref<256x128xf32, #tpu.memory_space<vmem>>, %arg5: memref<1x128xf32, #tpu.memory_space<vmem>>, %arg6: memref<8x128xf32, #tpu.memory_space<vmem>>, %arg7: memref<8x1x256xf32, #tpu.memory_space<vmem>>, %arg8: memref<8x1x1xf32, #tpu.memory_space<vmem>>) attributes {dimension_semantics = [#tpu.dimension_semantics<parallel>, #tpu.dimension_semantics<arbitrary>], iteration_bounds = array<i64: 2, 2>, scalar_prefetch = 0 : i64, scratch_operands = 2 : i64, tpu.core_type = #tpu.core_type<tc>, window_params = [{transform_indices = @transform_0, window_bounds = array<i64: 8, 256, 256>}, {transform_indices = @transform_1, window_bounds = array<i64: 8, 1, 256>}, {pipeline_mode = #tpu.pipeline_mode<synchronous>, transform_indices = @transform_2, window_bounds = array<i64: 256, 128>}, {pipeline_mode = #tpu.pipeline_mode<synchronous>, transform_indices = @transform_3, window_bounds = array<i64: 1, 128>}, {transform_indices = @transform_4, window_bounds = array<i64: 8, 128>}]} {
    %c0_i32 = arith.constant 0 : i32
    %0 = arith.cmpi eq, %arg1, %c0_i32 : i32
    %1 = arith.extui %0 : i1 to i32
    %c0_i32_0 = arith.constant 0 : i32
    %2 = arith.cmpi ne, %1, %c0_i32_0 : i32
    scf.if %2 {
      %cst_20 = arith.constant 0.000000e+00 : f32
      %17 = vector.broadcast %cst_20 : f32 to vector<8x1x256xf32>
      %c0_21 = arith.constant 0 : index
      %c0_22 = arith.constant 0 : index
      %c0_23 = arith.constant 0 : index
      %18 = vector.load %arg7[%c0_21, %c0_22, %c0_23] : memref<8x1x256xf32, #tpu.memory_space<vmem>>, vector<8x1x256xf32>
      tpu.vector_store %arg7[%c0_21, %c0_22, %c0_23], %17 {strides = array<i32>} : memref<8x1x256xf32, #tpu.memory_space<vmem>>, vector<8x1x256xf32>,
      %cst_24 = arith.constant 0.000000e+00 : f32
      %19 = vector.broadcast %cst_24 : f32 to vector<8x1x1xf32>
      %c0_25 = arith.constant 0 : index
      %c0_26 = arith.constant 0 : index
      %c0_27 = arith.constant 0 : index
      %20 = vector.load %arg8[%c0_25, %c0_26, %c0_27] : memref<8x1x1xf32, #tpu.memory_space<vmem>>, vector<8x1x1xf32>
      tpu.vector_store %arg8[%c0_25, %c0_26, %c0_27], %19 {strides = array<i32>} : memref<8x1x1xf32, #tpu.memory_space<vmem>>, vector<8x1x1xf32>,
    } else {
    }
    %c0 = arith.constant 0 : index
    %c0_1 = arith.constant 0 : index
    %c0_2 = arith.constant 0 : index
    %3 = vector.load %arg2[%c0, %c0_1, %c0_2] : memref<8x256x256xf32, #tpu.memory_space<vmem>>, vector<8x256x256xf32>
    %c0_3 = arith.constant 0 : index
    %c0_4 = arith.constant 0 : index
    %c0_5 = arith.constant 0 : index
    %4 = vector.load %arg3[%c0_3, %c0_4, %c0_5] : memref<8x1x256xf32, #tpu.memory_space<vmem>>, vector<8x1x256xf32>
    %cst = arith.constant dense<0.000000e+00> : vector<8x1x256xf32>
    %5 = tpu.matmul %4, %3, %cst {dimension_numbers = #tpu.dot_dimension_numbers<[2], [1], [1], [2], [0, 0, 0, 1, 1, 2], [0], [0]>} : vector<8x1x256xf32>, vector<8x256x256xf32>, vector<8x1x256xf32> -> vector<8x1x256xf32>
    %c0_6 = arith.constant 0 : index
    %c0_7 = arith.constant 0 : index
    %c0_8 = arith.constant 0 : index
    %6 = vector.load %arg7[%c0_6, %c0_7, %c0_8] : memref<8x1x256xf32, #tpu.memory_space<vmem>>, vector<8x1x256xf32>
    %7 = arith.addf %6, %5 : vector<8x1x256xf32>
    %c0_9 = arith.constant 0 : index
    %c0_10 = arith.constant 0 : index
    %c0_11 = arith.constant 0 : index
    %8 = vector.load %arg7[%c0_9, %c0_10, %c0_11] : memref<8x1x256xf32, #tpu.memory_space<vmem>>, vector<8x1x256xf32>
    tpu.vector_store %arg7[%c0_9, %c0_10, %c0_11], %7 {strides = array<i32>} : memref<8x1x256xf32, #tpu.memory_space<vmem>>, vector<8x1x256xf32>,
    %c0_12 = arith.constant 0 : index
    %c0_13 = arith.constant 0 : index
    %c0_14 = arith.constant 0 : index
    %9 = vector.load %arg8[%c0_12, %c0_13, %c0_14] : memref<8x1x1xf32, #tpu.memory_space<vmem>>, vector<8x1x1xf32>
    %cst_15 = arith.constant dense<0.000000e+00> : vector<8x1xf32>
    %10 = vector.multi_reduction <add>, %4, %cst_15 [2] : vector<8x1x256xf32> to vector<8x1xf32>
    %11 = vector.shape_cast %10 : vector<8x1xf32> to vector<8x1x1xf32>
    %12 = arith.addf %9, %11 : vector<8x1x1xf32>
    %c0_16 = arith.constant 0 : index
    %c0_17 = arith.constant 0 : index
    %c0_18 = arith.constant 0 : index
    %13 = vector.load %arg8[%c0_16, %c0_17, %c0_18] : memref<8x1x1xf32, #tpu.memory_space<vmem>>, vector<8x1x1xf32>
    tpu.vector_store %arg8[%c0_16, %c0_17, %c0_18], %12 {strides = array<i32>} : memref<8x1x1xf32, #tpu.memory_space<vmem>>, vector<8x1x1xf32>,
    %c1_i32 = arith.constant 1 : i32
    %14 = arith.cmpi eq, %arg1, %c1_i32 : i32
    %15 = arith.extui %14 : i1 to i32
    %c0_i32_19 = arith.constant 0 : i32
    %16 = arith.cmpi ne, %15, %c0_i32_19 : i32
    scf.if %16 {
      %c0_20 = arith.constant 0 : index
      %c0_21 = arith.constant 0 : index
      %c0_22 = arith.constant 0 : index
      %17 = vector.load %arg7[%c0_20, %c0_21, %c0_22] : memref<8x1x256xf32, #tpu.memory_space<vmem>>, vector<8x1x256xf32>
      %18 = vector.shape_cast %17 : vector<8x1x256xf32> to vector<8x256xf32>
      %c0_23 = arith.constant 0 : index
      %c0_24 = arith.constant 0 : index
      %c0_25 = arith.constant 0 : index
      %19 = vector.load %arg8[%c0_23, %c0_24, %c0_25] : memref<8x1x1xf32, #tpu.memory_space<vmem>>, vector<8x1x1xf32>
      %20 = vector.shape_cast %19 : vector<8x1x1xf32> to vector<8x1xf32>
      %cst_26 = arith.constant 9.99999971E-10 : f32
      %21 = vector.broadcast %cst_26 : f32 to vector<8x1xf32>
      %22 = arith.maximumf %20, %21 : vector<8x1xf32>
      %23 = tpu.reciprocal %22 {approx = true} : vector<8x1xf32> -> vector<8x1xf32>
      %24 = vector.broadcast %23 : vector<8x1xf32> to vector<8x256xf32>
      %25 = arith.mulf %18, %24 : vector<8x256xf32>
      %c0_27 = arith.constant 0 : index
      %c0_28 = arith.constant 0 : index
      %26 = vector.load %arg4[%c0_27, %c0_28] : memref<256x128xf32, #tpu.memory_space<vmem>>, vector<256x128xf32>
      %cst_29 = arith.constant dense<0.000000e+00> : vector<8x128xf32>
      %27 = tpu.matmul %25, %26, %cst_29 {dimension_numbers = #tpu.dot_dimension_numbers<[1], [0], [0], [1], [0, 0, 1, 1], [], []>} : vector<8x256xf32>, vector<256x128xf32>, vector<8x128xf32> -> vector<8x128xf32>
      %c0_30 = arith.constant 0 : index
      %c0_31 = arith.constant 0 : index
      %28 = vector.load %arg5[%c0_30, %c0_31] : memref<1x128xf32, #tpu.memory_space<vmem>>, vector<1x128xf32>
      %29 = vector.broadcast %28 : vector<1x128xf32> to vector<8x128xf32>
      %30 = arith.addf %27, %29 : vector<8x128xf32>
      %c0_32 = arith.constant 0 : index
      %c0_33 = arith.constant 0 : index
      %31 = vector.load %arg6[%c0_32, %c0_33] : memref<8x128xf32, #tpu.memory_space<vmem>>, vector<8x128xf32>
      tpu.vector_store %arg6[%c0_32, %c0_33], %30 {strides = array<i32>} : memref<8x128xf32, #tpu.memory_space<vmem>>, vector<8x128xf32>,
    } else {
    }
    return
  }
  func.func @transform_0(%arg0: i32, %arg1: i32) -> (i32, i32, i32) {
    %c0_i32 = arith.constant 0 : i32
    %c0_i32_0 = arith.constant 0 : i32
    return %arg0, %arg1, %c0_i32 : i32, i32, i32
  }
  func.func @transform_1(%arg0: i32, %arg1: i32) -> (i32, i32, i32) {
    %c0_i32 = arith.constant 0 : i32
    %c0_i32_0 = arith.constant 0 : i32
    return %arg0, %c0_i32, %arg1 : i32, i32, i32
  }
  func.func @transform_2(%arg0: i32, %arg1: i32) -> (i32, i32) {
    %c0_i32 = arith.constant 0 : i32
    %c0_i32_0 = arith.constant 0 : i32
    %c0_i32_1 = arith.constant 0 : i32
    return %c0_i32, %c0_i32_0 : i32, i32
  }
  func.func @transform_3(%arg0: i32, %arg1: i32) -> (i32, i32) {
    %c0_i32 = arith.constant 0 : i32
    %c0_i32_0 = arith.constant 0 : i32
    %c0_i32_1 = arith.constant 0 : i32
    return %c0_i32, %c0_i32_0 : i32, i32
  }
  func.func @transform_4(%arg0: i32, %arg1: i32) -> (i32, i32) {
    %c0_i32 = arith.constant 0 : i32
    %c0_i32_0 = arith.constant 0 : i32
    return %arg0, %c0_i32 : i32, i32
  }
}

</mosaic_0001>

<bundles_post_ra>
// kernel: tpu_custom_call.1
= control target key start
LH: loop header
LB: loop body
LE: loop exit
PB: predicated region body
PF: predicated region fallthrough
CT: control target
= control target key end

     0   :  { %s4296_s0 = inlined_call_operand.hbm [shape: f32[16,512,256], index: 0, kind: input, shape index: {}]   ;;  %s4297_s1 = inlined_call_operand.hbm [shape: f32[16,1,512], index: 1, kind: input, shape index: {}]   ;;  %s4298_s2 = inlined_call_operand.hbm [shape: f32[256,128], index: 2, kind: input, shape index: {}]   ;;  %s4299_s3 = inlined_call_operand.hbm [shape: f32[1,128], index: 3, kind: input, shape index: {}]   ;;  %s4300_s4 = inlined_call_operand.hbm [shape: f32[16,128], index: 4, kind: output, shape index: {}]  }
   0x1   :  { %4312 = sst [smem:[#allocation28_spill]] %s4296_s0 }
   0x2   :  { %4313 = sst [smem:[#allocation29_spill]] %s4298_s2 }
   0x3   :  { %4314 = sst [smem:[#allocation30_spill]] %s4299_s3 }
   0x4   :  { %4315 = sst [smem:[#allocation31_spill]] %s4300_s4 }
   0x5   :  { %9 = vsyncpa [#allocation5], 0 }
   0x6   :  { %11 = vsyncpa [#allocation5 + $0x1], 0 }
   0x7   :  { %12 = vsyncpa [#allocation8], 0 }
   0x8   :  { %14 = vsyncpa [#allocation8 + $0x1], 0 }
   0x9   :  { %15 = vsyncpa [#allocation11], 0 }
   0xa   :  { %16 = vsyncpa [#allocation6], 0 }
   0xb   :  { %18 = vsyncpa [#allocation6 + $0x1], 0  ;;  %s3255_s15 = smov 0   ;;  %s3257_s16 = smov 0  }
   0xc   :  { %s3259_s17 = smov 0   ;;  %s3261_s18 = smov 0  }
   0xd   :  { %s3263_s19 = smov 0   ;;  %s3265_s20 = smov 0  }
   0xe   :  { %s3267_s21 = smov 0   ;;  %s3269_s22 = smov 0  }
   0xf   :  { %s3271_s23 = smov 0   ;;  %s3273_s24 = smov 0  }
  0x10   :  { %s3275_s25 = smov 0  }
  0x11 LB: > { %4316 = sst [smem:[#allocation21_spill]] %s3170_s15  ;;  %s3309_s26 = sadd.s32 4294967295, %s3210_s25   ;;  %s3210_s25 = sphi %s3275_s25, %s24_s25   ;;  %s3206_s24 = sphi %s3273_s24, %s4360_s24   ;;  %s3202_s23 = sphi %s3271_s23, %s4359_s23   ;;  %s3198_s22 = sphi %s3269_s22, %s4358_s22   ;;  %s3194_s21 = sphi %s3267_s21, %s4357_s21   ;;  %s3190_s20 = sphi %s3265_s20, %s4356_s20   ;;  %s3186_s19 = sphi %s3263_s19, %s4355_s19   ;;  %s3182_s18 = sphi %s3261_s18, %s4354_s18   ;;  %s3178_s17 = sphi %s3259_s17, %s4348_s17   ;;  %s3174_s16 = sphi %s3257_s16, %s4353_s16   ;;  %s3170_s15 = sphi %s3255_s15, %s4352_s15  }
  0x12   : > { %4317 = sst [smem:[#allocation22_spill]] %s3178_s17  ;;  %s2220_s27 = sadd.s32 4294967294, %s3210_s25  }
  0x13   : > { %s33_s28 = sadd.s32 1, %s3202_s23  ;;  %s36_s29 = sadd.s32 1, %s3206_s24 }
  0x14   : > { %p34_p0 = scmp.ge.s32.totalorder %s33_s28, 2  ;;  %s45_s30 = sadd.s32 1, %s3190_s20 }
  0x15   : > { %p52_p1 = scmp.ne.s32.totalorder %s3190_s20, %s3186_s19  ;;  %p53_p2 = scmp.eq.s32.totalorder %s3210_s25, 0 }
  0x16   : > { %s4362_s28 = smov (%p34_p0, %s33_s28), 0  ;;  %s4364_s29 = smov (!%p34_p0, %s36_s29), %s3206_s24 }
  0x17   : > { %4318 = sst [smem:[#allocation23_spill]] %s4362_s28  ;;  %s41_s5 = ssub.s32 %s3202_s23, %s4362_s28 }
  0x18   : > { %p3323_p3 = por %p53_p2, %p52_p1  ;;  %p38_p4 = scmp.ge.s32.totalorder %s4364_s29, 2 }
  0x19   : > { %p58_p5 = scmp.ne.s32.totalorder %s3186_s19, %s3182_s18  ;;  %p4304_p6 = scmp.eq.s32.totalorder %s3309_s26, 0 }
  0x1a   : > { %s4319_s6 = scalar_select %p3323_p3, 1, 0 }
  0x1b   : > { %s141_s7 = sadd.s32 1, %s3178_s17  ;;  %s4366_s29 = smov (%p38_p4, %s4364_s29), 0 }
  0x1c   : > { %4320 = sst [smem:[#allocation24_spill]] %s4366_s29  ;;  %p3334_p7 = por %p4304_p6, %p58_p5 }
  0x1d   : > { %p151_p8 = scmp.ne.s32.totalorder %s3178_s17, %s3174_s16  ;;  %s40_s9 = ssub.s32 %s3206_s24, %s4366_s29 }
  0x1e   : > { %s4321_s8 = scalar_select %p3334_p7, 1, 0 }
  0x1f   : > { %p152_p9 = scmp.eq.s32.totalorder %s3309_s26, 3  ;;  %s42_s10 = sor.u32 %s41_s5, %s40_s9 }
  0x20   : > { %p139_p10 = scmp.eq.s32.totalorder %s40_s9, 0  ;;  %p43_p11 = scmp.eq.s32.totalorder %s42_s10, 0 }
  0x21   : > { %p3343_p12 = por %p152_p9, %p151_p8  ;;  %p157_p13 = scmp.ne.s32.totalorder %s3174_s16, %s3170_s15 }
  0x22   : > { %s3348_s12 = scalar_select %p139_p10, %s3178_s17, %s141_s7  }
  0x23   : > { %s4322_s11 = scalar_select %p3343_p12, 1, 0 }
  0x24   : > { %4323 = sst [smem:[#allocation25_spill]] %s3348_s12  ;;  %p158_p0 = scmp.eq.s32.totalorder %s2220_s27, 3 }
  0x25   : > { %s3351_s13 = scalar_select %p43_p11, %s3190_s20, %s45_s30  }
  0x26   : > { %p2221_p1 = scmp.ge.s32.totalorder %s3210_s25, 1  ;;  %p165_p2 = scmp.lt.s32.totalorder %s3210_s25, 5 }
  0x27   : > { %4324 = sst [smem:[#allocation26_spill]] %s3351_s13  ;;  %p3357_p4 = por %p158_p0, %p157_p13 }
  0x28   : > { %p3361_p5 = pnand %p2221_p1, %p165_p2  ;;  %s3212_s5 = smov [#allocation9]  }
  0x29   : > { %s4325_s14 = scalar_select %p3357_p4, 1, 0 }
  0x2a   : > { %s4327_s18 = scalar_select %p3361_p5, 1, 0 }
  0x2b   : > { %4326 = sst [smem:[#allocation27_spill]] %s4325_s14  ;;  %s177_s9 = sshll.u32 %s3212_s5, 4  ;;  %s178_s9 = int_to_ptr.vmem [resolvable:$true] %s177_s9 }
  0x2c   : > { %p2854_p8 = pneg %p3361_p5  ;;  %s3213_s27 = smov [#allocation10]  }
  0x2d   : > { %s191_s7 = sshll.u32 %s3213_s27, 4  ;;  %s4329_s2 = sld [smem:[#allocation29_spill]]  ;;  %s3373_s7 = int_to_ptr.vmem [resolvable:$true] %s191_s7 }
  0x2e   : > { %p3369_p9 = pnand %p2854_p8, %p4304_p6 }
  0x30   : > { %p2994_p11 = pneg %p3369_p9 }
  0x33   : > { %s2992_s28 = scalar_lea.hbm %s4329_s2, 4096 }
  0x34   : > { %p2993_p10 = scmp.ne.s32.totalorder %s4329_s2, %s2992_s28  ;;  %p2999_p1 = scmp.lt.u32.totalorder %s2992_s28, %s4329_s2 }
  0x36   : > { %p2995_p13 = pnand %p2994_p11, %p2993_p10 }
  0x38   : > { %p2996_p0 = pneg %p2995_p13 }
  0x3a   : > { %p3001_p2 = pnand %p2999_p1, %p2996_p0 }
  0x3c   : > { %3004 = shalt.err (!%p3001_p2)
}
  0x3d   : > { %s3005_s27 = scalar_lea.vmem %s178_s9, 4096  ;;  %p3013_p12 = scmp.lt.s32.totalorder %s178_s9, %s178_s9 }
  0x3e   : > { %p3006_p8 = scmp.ne.s32.totalorder %s178_s9, %s3005_s27  ;;  %p3014_p7 = scmp.lt.s32.totalorder %s3005_s27, %s3005_s27 }
  0x40   : > { %p3008_p6 = pnand %p3006_p8, %p2994_p11  ;;  %p3015_p5 = por %p3014_p7, %p3013_p12 }
  0x42   : > { %p3009_p4 = pneg %p3008_p6 }
  0x44   : > { %p3016_p3 = pnand %p3015_p5, %p3009_p4 }
  0x46   : > { %3019 = shalt.err (!%p3016_p3)
}
  0x47   : > { %s3214_s29 = smov 128   ;;  %s3215_s13 = smov 8  }
  0x48   : > { %2857 = dma.hbm_to_vmem [thread:$0]  (!%p3369_p9), %s4329_s2, 4096, %s178_s9, [#allocation8], %s3214_s29, %s3214_s29, %s3215_s13  }
  0x49   : > { %s4330_s3 = sld [smem:[#allocation30_spill]] }
  0x4f   : > { %s3020_s5 = scalar_lea.hbm %s4330_s3, 16 }
  0x50   : > { %p3021_p6 = scmp.ne.s32.totalorder %s4330_s3, %s3020_s5  ;;  %p3027_p12 = scmp.lt.u32.totalorder %s3020_s5, %s4330_s3 }
  0x52   : > { %p3023_p3 = pnand %p3021_p6, %p2994_p11 }
  0x54   : > { %p3024_p7 = pneg %p3023_p3 }
  0x56   : > { %p3029_p4 = pnand %p3027_p12, %p3024_p7 }
  0x58   : > { %3032 = shalt.err (!%p3029_p4)
}
  0x59   : > { %s3033_s9 = scalar_lea.vmem %s3373_s7, 16  ;;  %s3040_s15 = scalar_lea.vmem %s3373_s7, 32 }
  0x5a   : > { %p3034_p5 = scmp.ne.s32.totalorder %s3373_s7, %s3033_s9  ;;  %p3041_p0 = scmp.lt.s32.totalorder %s3373_s7, %s3373_s7 }
  0x5b   : > { %p3042_p1 = scmp.lt.s32.totalorder %s3040_s15, %s3033_s9 }
  0x5c   : > { %p3036_p10 = pnand %p3034_p5, %p2994_p11 }
  0x5d   : > { %p3043_p2 = por %p3042_p1, %p3041_p0 }
  0x5e   : > { %p3037_p13 = pneg %p3036_p10 }
  0x60   : > { %p3044_p8 = pnand %p3043_p2, %p3037_p13 }
  0x62   : > { %3047 = shalt.err (!%p3044_p8)
}
  0x63   : > { %2860 = dma.hbm_to_vmem [thread:$0]  (!%p3369_p9), %s4330_s3, 16, %s3373_s7, [#allocation11]  }
  0x64   : > { %p2224_p6 = scmp.ge.s32.totalorder %s3210_s25, 4 }
  0x66   : > { %198 = sbr.rel (%p2224_p6) target bundleno = 153 (0x99), region = 24 }
  0x6d   : > { %s3425_s29 = sand.u32 1, %s3190_s20   ;;  %s2251_s13 = sshll.u32 %s3202_s23, 6 }
  0x6e   : > { %s2225_s30 = sshll.u32 %s3425_s29, 12  ;;  %s2252_s17 = sshll.u32 %s3206_s24, 10 }
  0x6f   : > { %s214_s28 = sadd.s32 %s2252_s17, %s2251_s13  ;;  %s206_s7 = scalar_lea.vmem [#allocation4], %s2225_s30 }
  0x70   : > { %s229_s12 = sshll.u32 %s206_s7, 4  ;;  %s2230_s10 = sshll.u32 %s214_s28, 7  ;;  %s230_s12 = int_to_ptr.vmem [resolvable:$true] %s229_s12 }
  0x71   : > { %p4331_p9 = scmp.ne.s32.totalorder %s4319_s6, 0  ;;  %s3216_s27 = smov 16384  }
  0x72   : > { %s3217_s15 = smov 8192   ;;  %s3218_s4 = smov 32  }
  0x73   : > { %s2837_s5 = scalar_select %p4331_p9, [#allocation0], [#allocation15] }
  0x74   : > { %2838 = sst [smem:[#allocation14]] (%p4331_p9), %s3216_s27  ;;  %s3219_s14 = smov 256  }
  0x75   : > { %s221_s9 = sld [smem:[%s2837_s5]]   ;;  %s3220_s28 = smov 16  }
  0x76   : > { %2839 = sst [smem:[#allocation14 + $0x1]] (%p4331_p9), %s3217_s15  ;;  %s4332_s0 = sld [smem:[#allocation28_spill]] }
  0x77   : > { %2840 = sst [smem:[#allocation14 + $0x2]] (%p4331_p9), %s3218_s4  ;;  %s203_s27 = scalar_lea.sflag [#allocation5], %s3425_s29 }
  0x78   : > { %2841 = sst [smem:[#allocation14 + $0x3]] (%p4331_p9), %s3219_s14  ;;  %s3221_s15 = smov [#allocation13]  }
  0x79   : > { %2842 = sst [smem:[#allocation14 + $0x4]] (%p4331_p9), %s3219_s14  ;;  %s252_s4 = sand.u32 1, %s3210_s25  }
  0x7a   : > { %2843 = sst [smem:[#allocation14 + $0x5]] (%p4331_p9), %s3220_s28  ;;  %s2233_s2 = sshll.u32 %s3425_s29, 4 }
  0x7b   : > { %s2231_s7 = sshll.u32 %s221_s9, 26  ;;  %s2235_s13 = sshll.u32 %s3202_s23, 1 }
  0x7c   : > { %s216_s17 = scalar_lea.hbm %s4332_s0, %s2230_s10  ;;  %s2232_s5 = sadd.s32 134217728, %s2231_s7 }
  0x7d   : > { %2844 = dma.general (%p4331_p9), %s216_s17, 65536, %s230_s12, %s203_s27, %s3221_s15, [#allocation14], %s2232_s5, 0  }
  0x7e   : > { %s2253_s10 = sshll.u32 %s3206_s24, 5  ;;  %s256_s14 = scalar_lea.vmem [#allocation7], %s2233_s2 }
  0x7f   : > { %s263_s30 = sadd.s32 %s2253_s10, %s2235_s13  ;;  %s266_s0 = sshll.u32 %s256_s14, 4  ;;  %s3454_s0 = int_to_ptr.vmem [resolvable:$true] %s266_s0 }
  0x80   : > { %s2237_s3 = sshll.u32 %s263_s30, 4  ;;  %s3461_s12 = scalar_lea.sflag [#allocation8], %s252_s4 }
  0x81   : > { %s3459_s7 = scalar_lea.hbm %s4297_s1, %s2237_s3  ;;  %s3052_s5 = scalar_lea.hbm %s4297_s1, 1024 }
  0x82   : > { %s3048_s29 = scalar_lea.hbm %s3459_s7, 256  ;;  %p3053_p12 = scmp.lt.u32.totalorder %s3459_s7, %s4297_s1 }
  0x83   : > { %p3049_p11 = scmp.ne.s32.totalorder %s3459_s7, %s3048_s29  ;;  %p3054_p4 = scmp.lt.u32.totalorder %s3052_s5, %s3048_s29 }
  0x84   : > { %p3056_p10 = scmp.lt.u32.totalorder %s3048_s29, %s3459_s7 }
  0x85   : > { %p3050_p3 = pnand %p3049_p11, %p4331_p9  ;;  %p3055_p5 = por %p3054_p4, %p3053_p12 }
  0x87   : > { %p3051_p7 = pneg %p3050_p3  ;;  %p3057_p13 = por %p3056_p10, %p3055_p5 }
  0x89   : > { %p3058_p0 = pnand %p3057_p13, %p3051_p7 }
  0x8b   : > { %3061 = shalt.err (!%p3058_p0)
}
  0x8c   : > { %s3062_s3 = scalar_lea.vmem %s3454_s0, 256  ;;  %s3222_s4 = smov [#allocation7]  }
  0x8d   : > { %p3063_p1 = scmp.ne.s32.totalorder %s3454_s0, %s3062_s3  ;;  %s3066_s13 = sshll.u32 %s3222_s4, 4  ;;  %s3067_s13 = int_to_ptr.vmem [resolvable:$false] %s3066_s13 }
  0x8e   : > { %s3068_s10 = scalar_lea.vmem %s3067_s13, 512  ;;  %p3069_p6 = scmp.lt.s32.totalorder %s3454_s0, %s3067_s13 }
  0x8f   : > { %p3064_p2 = pnand %p3063_p1, %p4331_p9  ;;  %p3070_p11 = scmp.lt.s32.totalorder %s3068_s10, %s3062_s3 }
  0x91   : > { %p3065_p8 = pneg %p3064_p2  ;;  %p3071_p3 = por %p3070_p11, %p3069_p6 }
  0x93   : > { %p3072_p12 = pnand %p3071_p3, %p3065_p8 }
  0x95   : > { %3075 = shalt.err (!%p3072_p12)
}
  0x96   : > { %s3223_s30 = smov 64   ;;  %s3224_s14 = smov 32  }
  0x97   : > { %s3225_s9 = smov 2  }
  0x98   : > { %2845 = dma.hbm_to_vmem [thread:$0]  (%p4331_p9), %s3459_s7, 256, %s3454_s0, %s3461_s12, %s3223_s30, %s3224_s14, %s3225_s9  }
  0x99 PF: > { %p4333_p7 = scmp.ne.s32.totalorder %s4327_s18, 0 }
  0x9a   : > { %s280_s28 = sand.u32 (!%p4333_p7), 1, %s3186_s19   ;;  %p4334_p4 = scmp.ne.s32.totalorder (!%p4333_p7), %s4321_s8, 0 }
  0x9b   : > { %278 = sbr.rel (%p4333_p7) target bundleno = 1044 (0x414), region = 36  ;;  %s2239_s29 = sshll.u32 (!%p4333_p7), %s280_s28, 12 }
  0x9c   : > { %s281_s2 = scalar_lea.sflag (!%p4333_p7), [#allocation5], %s280_s28  ;;  %s3488_s17 = scalar_lea.vmem (!%p4333_p7), [#allocation4], %s2239_s29 }
  0xa2   : > { %3149 = dma.done.wait (%p4334_p4), %s281_s2, 65536  }
  0xa3   : > { %3151 = vsyncadd (%p4334_p4), %s281_s2, 4294901760  ;;  %s289_s6 = sand.u32 1, %s3309_s26   ;;  %s2240_s0 = sshll.u32 %s280_s28, 4 }
  0xa4   : > { %s290_s7 = scalar_lea.sflag [#allocation8], %s289_s6  ;;  %s3495_s12 = scalar_lea.vmem [#allocation7], %s2240_s0 }
  0xa5   : > { %3153 = dma.done.wait (%p4334_p4), %s290_s7, 256  }
  0xa6   : > { %3155 = vsyncadd (%p4334_p4), %s290_s7, 4294967040  ;;  %p4335_p9 = scmp.eq.s32.totalorder %s3309_s26, 0 }
  0xa8   : > { %3157 = dma.done.wait (%p4335_p9), [#allocation8], 4096   ;;  %p4336_p5 = pmov %p4335_p9 }
  0xaa   : > { %3159 = vsyncadd (%p4336_p5), [#allocation8], 4294963200  ;;  %p4337_p10 = pmov %p4336_p5 }
  0xab   : > { %p4338_p13 = pmov %p4336_p5 }
  0xac   : > { %3161 = dma.done.wait (%p4337_p10), [#allocation11], 16  }
  0xad   : > { %3163 = vsyncadd (%p4338_p13), [#allocation11], 4294967280  ;;  %s328_s18 = sand.u32 1, %s3174_s16   ;;  %p2244_p0 = scmp.ne.s32.totalorder %s3194_s21, 0 }
  0xae   : > { %s3512_s5 = sshll.u32 %s328_s18, 3  ;;  %v339_v0 = vlaneseq (!%p2244_p0)  ;;  %vm351_vm0 = vcmask (!%p2244_p0), 0   ;;  %v3226_v1 = vmov (!%p2244_p0), 0.0  }
  0xaf   : > { %s330_s8 = scalar_lea.vmem [#allocation12], %s3512_s5  ;;  %338 = sbr.rel (%p2244_p0) target bundleno = 183 (0xb7), region = 56  ;;  %352 = vst.msk [vmem:[#allocation3] sm:$0x1] (!%p2244_p0), %vm351_vm0, %v3226_v1  ;;  %353 = vst.msk [vmem:[#allocation3 + $0x1] sm:$0x1] (!%p2244_p0), %vm351_vm0, %v3226_v1 }
  0xb0   : > { %354 = vst.msk [vmem:[#allocation3 + $0x2] sm:$0x1] (!%p2244_p0), %vm351_vm0, %v3226_v1  ;;  %355 = vst.msk [vmem:[#allocation3 + $0x3] sm:$0x1] (!%p2244_p0), %vm351_vm0, %v3226_v1  ;;  %vm341_vm1 = vcmp.lt.s32.totalorder (!%p2244_p0), %v339_v0, 256 }
  0xb1   : > { %356 = vst.msk [vmem:[#allocation3 + $0x4] sm:$0x1] (!%p2244_p0), %vm351_vm0, %v3226_v1  ;;  %357 = vst.msk [vmem:[#allocation3 + $0x5] sm:$0x1] (!%p2244_p0), %vm351_vm0, %v3226_v1 }
  0xb2   : > { %358 = vst.msk [vmem:[#allocation3 + $0x6] sm:$0x1] (!%p2244_p0), %vm351_vm0, %v3226_v1  ;;  %359 = vst.msk [vmem:[#allocation3 + $0x7] sm:$0x1] (!%p2244_p0), %vm351_vm0, %v3226_v1 }
  0xb3   : > { %343 = vst.msk [vmem:[#allocation2] sm:$0x3] (!%p2244_p0), %vm341_vm1, %v3226_v1  ;;  %344 = vst.msk [vmem:[#allocation2 + $0x2] sm:$0x3] (!%p2244_p0), %vm341_vm1, %v3226_v1 }
  0xb4   : > { %345 = vst.msk [vmem:[#allocation2 + $0x4] sm:$0x3] (!%p2244_p0), %vm341_vm1, %v3226_v1  ;;  %346 = vst.msk [vmem:[#allocation2 + $0x6] sm:$0x3] (!%p2244_p0), %vm341_vm1, %v3226_v1 }
  0xb5   : > { %347 = vst.msk [vmem:[#allocation2 + $0x8] sm:$0x3] (!%p2244_p0), %vm341_vm1, %v3226_v1  ;;  %348 = vst.msk [vmem:[#allocation2 + $0xa] sm:$0x3] (!%p2244_p0), %vm341_vm1, %v3226_v1 }
  0xb6   : > { %349 = vst.msk [vmem:[#allocation2 + $0xc] sm:$0x3] %vm341_vm1, %v3226_v1  ;;  %350 = vst.msk [vmem:[#allocation2 + $0xe] sm:$0x3] %vm341_vm1, %v3226_v1 }
  0xb7 PF: > { %v361_v2 = vld [vmem:[%s3488_s17 + $0x8] sm:$0xff]  ;;  %v363_v3 = vld [vmem:[%s3488_s17 + $0x18] sm:$0xff]  ;;  %v360_v7 = vld [vmem:[%s3488_s17] sm:$0xff]  ;;  %vm1716_vm2 = vcmask 1040384   ;;  %vm1765_vm4 = vcmask 0   ;;  %p2245_p1 = scmp.ne.s32.totalorder %s3194_s21, 1 }
  0xb8   : > { %v425_v4 = vld [vmem:[%s3488_s17 + $0x208] sm:$0xff]  ;;  %v2289_v5 = vpack.c.bf16 %v363_v3, %v361_v2  ;;  %v427_v6 = vld [vmem:[%s3488_s17 + $0x218] sm:$0xff]  ;;  %v362_v8 = vld [vmem:[%s3488_s17 + $0x10] sm:$0xff] }
  0xb9   : > { %v2353_v9 = vpack.c.bf16 %v427_v6, %v425_v4  ;;  %v2291_v10 = vpack.c.bf16 %v362_v8, %v360_v7  ;;  %v424_v11 = vld [vmem:[%s3488_s17 + $0x200] sm:$0xff]  ;;  %v426_v12 = vld [vmem:[%s3488_s17 + $0x210] sm:$0xff]  ;;  %v365_v13 = vld [vmem:[%s3488_s17 + $0x28] sm:$0xff] }
  0xba   : > { %2290 = vmatprep.subr.bf16.mxu0 %v2289_v5  ;;  %v2355_v14 = vpack.c.bf16 %v426_v12, %v424_v11  ;;  %v367_v15 = vld [vmem:[%s3488_s17 + $0x38] sm:$0xff]  ;;  %v429_v16 = vld [vmem:[%s3488_s17 + $0x228] sm:$0xff]  ;;  %v364_v20 = vld [vmem:[%s3488_s17 + $0x20] sm:$0xff] }
  0xbb   : > { %v431_v17 = vld [vmem:[%s3488_s17 + $0x238] sm:$0xff]  ;;  %2354 = vmatprep.subr.bf16.mxu1 %v2353_v9  ;;  %2292 = vmatpush1.bf16.msra.mxu0 %v2291_v10  ;;  %v2293_v18 = vpack.c.bf16 %v367_v15, %v365_v13  ;;  %v366_v21 = vld [vmem:[%s3488_s17 + $0x30] sm:$0xff]  ;;  %v428_v22 = vld [vmem:[%s3488_s17 + $0x220] sm:$0xff] }
  0xbc   : > { %v2357_v19 = vpack.c.bf16 %v431_v17, %v429_v16  ;;  %2356 = vmatpush1.bf16.msra.mxu1 %v2355_v14  ;;  %v2295_v23 = vpack.c.bf16 %v366_v21, %v364_v20  ;;  %v430_v24 = vld [vmem:[%s3488_s17 + $0x230] sm:$0xff]  ;;  %v369_v25 = vld [vmem:[%s3488_s17 + $0x48] sm:$0xff]  ;;  %v371_v26 = vld [vmem:[%s3488_s17 + $0x58] sm:$0xff] }
  0xbd   : > { %2294 = vmatprep.subr.bf16.mxu0 %v2293_v18  ;;  %v2359_v27 = vpack.c.bf16 %v430_v24, %v428_v22  ;;  %v2297_v28 = vpack.c.bf16 %v371_v26, %v369_v25  ;;  %v433_v29 = vld [vmem:[%s3488_s17 + $0x248] sm:$0xff]  ;;  %v435_v30 = vld [vmem:[%s3488_s17 + $0x258] sm:$0xff]  ;;  %v368_v31 = vld [vmem:[%s3488_s17 + $0x40] sm:$0xff] }
  0xbe   : > { %2358 = vmatprep.subr.bf16.mxu1 %v2357_v19  ;;  %v2361_v32 = vpack.c.bf16 %v435_v30, %v433_v29  ;;  %v370_v33 = vld [vmem:[%s3488_s17 + $0x50] sm:$0xff]  ;;  %v432_v34 = vld [vmem:[%s3488_s17 + $0x240] sm:$0xff]  ;;  %v373_v37 = vld [vmem:[%s3488_s17 + $0x68] sm:$0xff] }
  0xbf   : > { %v434_v35 = vld [vmem:[%s3488_s17 + $0x250] sm:$0xff]  ;;  %2296 = vmatpush1.bf16.msra.mxu0 %v2295_v23  ;;  %v2299_v36 = vpack.c.bf16 %v370_v33, %v368_v31  ;;  %v375_v38 = vld [vmem:[%s3488_s17 + $0x78] sm:$0xff]  ;;  %v437_v39 = vld [vmem:[%s3488_s17 + $0x268] sm:$0xff] }
  0xc0   : > { %2360 = vmatpush1.bf16.msra.mxu1 %v2359_v27  ;;  %2298 = vmatprep.subr.bf16.mxu0 %v2297_v28  ;;  %v2363_v40 = vpack.c.bf16 %v434_v35, %v432_v34  ;;  %v2301_v41 = vpack.c.bf16 %v375_v38, %v373_v37  ;;  %v439_v42 = vld [vmem:[%s3488_s17 + $0x278] sm:$0xff]  ;;  %v372_v43 = vld [vmem:[%s3488_s17 + $0x60] sm:$0xff]  ;;  %v374_v44 = vld [vmem:[%s3488_s17 + $0x70] sm:$0xff] }
  0xc1   : > { %2362 = vmatprep.subr.bf16.mxu1 %v2361_v32  ;;  %v2365_v45 = vpack.c.bf16 %v439_v42, %v437_v39  ;;  %v436_v46 = vld [vmem:[%s3488_s17 + $0x260] sm:$0xff]  ;;  %v438_v47 = vld [vmem:[%s3488_s17 + $0x270] sm:$0xff]  ;;  %v377_v48 = vld [vmem:[%s3488_s17 + $0x88] sm:$0xff]  ;;  %v2303_v52 = vpack.c.bf16 %v374_v44, %v372_v43 }
  0xc2   : > { %v379_v49 = vld [vmem:[%s3488_s17 + $0x98] sm:$0xff]  ;;  %v441_v50 = vld [vmem:[%s3488_s17 + $0x288] sm:$0xff]  ;;  %v2367_v53 = vpack.c.bf16 %v438_v47, %v436_v46  ;;  %v376_v55 = vld [vmem:[%s3488_s17 + $0x80] sm:$0xff] }
  0xc3   : > { %v443_v51 = vld [vmem:[%s3488_s17 + $0x298] sm:$0xff]  ;;  %2300 = vmatpush1.bf16.msra.mxu0 %v2299_v36  ;;  %v2305_v54 = vpack.c.bf16 %v379_v49, %v377_v48  ;;  %v378_v56 = vld [vmem:[%s3488_s17 + $0x90] sm:$0xff]  ;;  %v440_v57 = vld [vmem:[%s3488_s17 + $0x280] sm:$0xff]  ;;  %v881_v48 = vlaneseq }
  0xc4   : > { %2364 = vmatpush1.bf16.msra.mxu1 %v2363_v40  ;;  %2302 = vmatprep.subr.bf16.mxu0 %v2301_v41  ;;  %v2369_v58 = vpack.c.bf16 %v443_v51, %v441_v50  ;;  %v442_v59 = vld [vmem:[%s3488_s17 + $0x290] sm:$0xff]  ;;  %v381_v60 = vld [vmem:[%s3488_s17 + $0xa8] sm:$0xff]  ;;  %v383_v61 = vld [vmem:[%s3488_s17 + $0xb8] sm:$0xff]  ;;  %v2307_v0 = vpack.c.bf16 %v378_v56, %v376_v55 }
  0xc5   : > { %2366 = vmatprep.subr.bf16.mxu1 %v2365_v45  ;;  %v445_v62 = vld [vmem:[%s3488_s17 + $0x2a8] sm:$0xff]  ;;  %v447_v63 = vld [vmem:[%s3488_s17 + $0x2b8] sm:$0xff]  ;;  %v2371_v1 = vpack.c.bf16 %v442_v59, %v440_v57  ;;  %v2309_v2 = vpack.c.bf16 %v383_v61, %v381_v60  ;;  %v380_v3 = vld [vmem:[%s3488_s17 + $0xa0] sm:$0xff]  ;;  %v3601_v61 = vshrl.u32 %v881_v48, 7  ;;  %vm4172_vm3 = vcmp.lt.s32.totalorder %v881_v48, 256 }
  0xc6   : > { %v382_v4 = vld [vmem:[%s3488_s17 + $0xb0] sm:$0xff]  ;;  %v444_v5 = vld [vmem:[%s3488_s17 + $0x2a0] sm:$0xff]  ;;  %v2373_v6 = vpack.c.bf16 %v447_v63, %v445_v62  ;;  %v385_v8 = vld [vmem:[%s3488_s17 + $0xc8] sm:$0xff] }
  0xc7   : > { %2304 = vmatpush1.bf16.msra.mxu0 %v2303_v52  ;;  %v446_v7 = vld [vmem:[%s3488_s17 + $0x2b0] sm:$0xff]  ;;  %v387_v9 = vld [vmem:[%s3488_s17 + $0xd8] sm:$0xff]  ;;  %v449_v10 = vld [vmem:[%s3488_s17 + $0x2c8] sm:$0xff]  ;;  %v2311_v12 = vpack.c.bf16 %v382_v4, %v380_v3 }
  0xc8   : > { %2368 = vmatpush1.bf16.msra.mxu1 %v2367_v53  ;;  %2306 = vmatprep.subr.bf16.mxu0 %v2305_v54  ;;  %v451_v11 = vld [vmem:[%s3488_s17 + $0x2d8] sm:$0xff]  ;;  %v2375_v13 = vpack.c.bf16 %v446_v7, %v444_v5  ;;  %v2313_v14 = vpack.c.bf16 %v387_v9, %v385_v8  ;;  %v384_v15 = vld [vmem:[%s3488_s17 + $0xc0] sm:$0xff]  ;;  %v386_v16 = vld [vmem:[%s3488_s17 + $0xd0] sm:$0xff] }
  0xc9   : > { %2370 = vmatprep.subr.bf16.mxu1 %v2369_v58  ;;  %v448_v17 = vld [vmem:[%s3488_s17 + $0x2c0] sm:$0xff]  ;;  %v2377_v18 = vpack.c.bf16 %v451_v11, %v449_v10  ;;  %v450_v19 = vld [vmem:[%s3488_s17 + $0x2d0] sm:$0xff]  ;;  %v389_v20 = vld [vmem:[%s3488_s17 + $0xe8] sm:$0xff]  ;;  %v2315_v24 = vpack.c.bf16 %v386_v16, %v384_v15  ;;  %v3612_v10 = vsub.s32 1, %v3601_v61 }
  0xca   : > { %v391_v21 = vld [vmem:[%s3488_s17 + $0xf8] sm:$0xff]  ;;  %v453_v22 = vld [vmem:[%s3488_s17 + $0x2e8] sm:$0xff]  ;;  %v2379_v25 = vpack.c.bf16 %v450_v19, %v448_v17  ;;  %v388_v27 = vld [vmem:[%s3488_s17 + $0xe0] sm:$0xff] }
  0xcb   : > { %2308 = vmatpush1.bf16.msra.mxu0 %v2307_v0  ;;  %v455_v23 = vld [vmem:[%s3488_s17 + $0x2f8] sm:$0xff]  ;;  %v2317_v26 = vpack.c.bf16 %v391_v21, %v389_v20  ;;  %v390_v28 = vld [vmem:[%s3488_s17 + $0xf0] sm:$0xff]  ;;  %v452_v29 = vld [vmem:[%s3488_s17 + $0x2e0] sm:$0xff] }
  0xcc   : > { %2372 = vmatpush1.bf16.msra.mxu1 %v2371_v1  ;;  %2310 = vmatprep.subr.bf16.mxu0 %v2309_v2  ;;  %v2381_v30 = vpack.c.bf16 %v455_v23, %v453_v22  ;;  %v454_v31 = vld [vmem:[%s3488_s17 + $0x2f0] sm:$0xff]  ;;  %v393_v32 = vld [vmem:[%s3488_s17 + $0x108] sm:$0xff]  ;;  %v395_v33 = vld [vmem:[%s3488_s17 + $0x118] sm:$0xff]  ;;  %v2319_v36 = vpack.c.bf16 %v390_v28, %v388_v27 }
  0xcd   : > { %2374 = vmatprep.subr.bf16.mxu1 %v2373_v6  ;;  %v457_v34 = vld [vmem:[%s3488_s17 + $0x308] sm:$0xff]  ;;  %v459_v35 = vld [vmem:[%s3488_s17 + $0x318] sm:$0xff]  ;;  %v2383_v37 = vpack.c.bf16 %v454_v31, %v452_v29  ;;  %v2321_v38 = vpack.c.bf16 %v395_v33, %v393_v32  ;;  %v392_v39 = vld [vmem:[%s3488_s17 + $0x100] sm:$0xff] }
  0xce   : > { %v394_v40 = vld [vmem:[%s3488_s17 + $0x110] sm:$0xff]  ;;  %v456_v41 = vld [vmem:[%s3488_s17 + $0x300] sm:$0xff]  ;;  %v2385_v42 = vpack.c.bf16 %v459_v35, %v457_v34  ;;  %v397_v44 = vld [vmem:[%s3488_s17 + $0x128] sm:$0xff] }
  0xcf   : > { %2312 = vmatpush1.bf16.msra.mxu0 %v2311_v12  ;;  %v458_v43 = vld [vmem:[%s3488_s17 + $0x310] sm:$0xff]  ;;  %v399_v45 = vld [vmem:[%s3488_s17 + $0x138] sm:$0xff]  ;;  %v461_v46 = vld [vmem:[%s3488_s17 + $0x328] sm:$0xff]  ;;  %v2323_v49 = vpack.c.bf16 %v394_v40, %v392_v39 }
  0xd0   : > { %2376 = vmatpush1.bf16.msra.mxu1 %v2375_v13  ;;  %2314 = vmatprep.subr.bf16.mxu0 %v2313_v14  ;;  %v463_v47 = vld [vmem:[%s3488_s17 + $0x338] sm:$0xff]  ;;  %v2387_v50 = vpack.c.bf16 %v458_v43, %v456_v41  ;;  %v2325_v51 = vpack.c.bf16 %v399_v45, %v397_v44  ;;  %v396_v52 = vld [vmem:[%s3488_s17 + $0x120] sm:$0xff]  ;;  %v398_v53 = vld [vmem:[%s3488_s17 + $0x130] sm:$0xff] }
  0xd1   : > { %2378 = vmatprep.subr.bf16.mxu1 %v2377_v18  ;;  %v460_v54 = vld [vmem:[%s3488_s17 + $0x320] sm:$0xff]  ;;  %v2389_v55 = vpack.c.bf16 %v463_v47, %v461_v46  ;;  %v462_v56 = vld [vmem:[%s3488_s17 + $0x330] sm:$0xff]  ;;  %v401_v57 = vld [vmem:[%s3488_s17 + $0x148] sm:$0xff]  ;;  %v2327_v62 = vpack.c.bf16 %v398_v53, %v396_v52 }
  0xd2   : > { %v403_v58 = vld [vmem:[%s3488_s17 + $0x158] sm:$0xff]  ;;  %v465_v59 = vld [vmem:[%s3488_s17 + $0x348] sm:$0xff]  ;;  %v2391_v63 = vpack.c.bf16 %v462_v56, %v460_v54  ;;  %v400_v1 = vld [vmem:[%s3488_s17 + $0x140] sm:$0xff] }
  0xd3   : > { %2316 = vmatpush1.bf16.msra.mxu0 %v2315_v24  ;;  %v467_v60 = vld [vmem:[%s3488_s17 + $0x358] sm:$0xff]  ;;  %v2329_v0 = vpack.c.bf16 %v403_v58, %v401_v57  ;;  %v402_v2 = vld [vmem:[%s3488_s17 + $0x150] sm:$0xff]  ;;  %v464_v3 = vld [vmem:[%s3488_s17 + $0x340] sm:$0xff] }
  0xd4   : > { %2380 = vmatpush1.bf16.msra.mxu1 %v2379_v25  ;;  %2318 = vmatprep.subr.bf16.mxu0 %v2317_v26  ;;  %v2393_v4 = vpack.c.bf16 %v467_v60, %v465_v59  ;;  %v466_v5 = vld [vmem:[%s3488_s17 + $0x350] sm:$0xff]  ;;  %v405_v6 = vld [vmem:[%s3488_s17 + $0x168] sm:$0xff]  ;;  %v407_v7 = vld [vmem:[%s3488_s17 + $0x178] sm:$0xff]  ;;  %v2331_v11 = vpack.c.bf16 %v402_v2, %v400_v1 }
  0xd5   : > { %2382 = vmatprep.subr.bf16.mxu1 %v2381_v30  ;;  %v469_v8 = vld [vmem:[%s3488_s17 + $0x368] sm:$0xff]  ;;  %v471_v9 = vld [vmem:[%s3488_s17 + $0x378] sm:$0xff]  ;;  %v404_v12 = vld [vmem:[%s3488_s17 + $0x160] sm:$0xff]  ;;  %v2395_v13 = vpack.c.bf16 %v466_v5, %v464_v3  ;;  %v2333_v14 = vpack.c.bf16 %v407_v7, %v405_v6 }
  0xd6   : > { %v406_v15 = vld [vmem:[%s3488_s17 + $0x170] sm:$0xff]  ;;  %v468_v16 = vld [vmem:[%s3488_s17 + $0x360] sm:$0xff]  ;;  %v2397_v18 = vpack.c.bf16 %v471_v9, %v469_v8  ;;  %v409_v19 = vld [vmem:[%s3488_s17 + $0x188] sm:$0xff] }
  0xd7   : > { %2320 = vmatpush1.bf16.msra.mxu0 %v2319_v36  ;;  %v470_v17 = vld [vmem:[%s3488_s17 + $0x370] sm:$0xff]  ;;  %v411_v20 = vld [vmem:[%s3488_s17 + $0x198] sm:$0xff]  ;;  %v473_v22 = vld [vmem:[%s3488_s17 + $0x388] sm:$0xff]  ;;  %v2335_v26 = vpack.c.bf16 %v406_v15, %v404_v12  ;;  %v3669_v12 = vsub.s32 0, %v3601_v61 }
  0xd8   : > { %2384 = vmatpush1.bf16.msra.mxu1 %v2383_v37  ;;  %2322 = vmatprep.subr.bf16.mxu0 %v2321_v38  ;;  %v3621_v21 = vld [vmem:[%s3495_s12] sm:$0x3]  ;;  %v475_v23 = vld [vmem:[%s3488_s17 + $0x398] sm:$0xff]  ;;  %v3630_v25 = vld [vmem:[%s3495_s12 + $0x2] sm:$0x3]  ;;  %v2399_v28 = vpack.c.bf16 %v470_v17, %v468_v16  ;;  %v2337_v29 = vpack.c.bf16 %v411_v20, %v409_v19 }
  0xd9   : > { %2386 = vmatprep.subr.bf16.mxu1 %v2385_v42  ;;  %v3627_v24 = vrot.slane %v3621_v21, %v3612_v10  ;;  %v3634_v27 = vrot.slane %v3630_v25, %v3612_v10  ;;  %v408_v30 = vld [vmem:[%s3488_s17 + $0x180] sm:$0xff]  ;;  %v410_v31 = vld [vmem:[%s3488_s17 + $0x190] sm:$0xff]  ;;  %v2401_v33 = vpack.c.bf16 %v475_v23, %v473_v22  ;;  %v413_v35 = vld [vmem:[%s3488_s17 + $0x1a8] sm:$0xff] }
  0xda   : > { %v472_v32 = vld [vmem:[%s3488_s17 + $0x380] sm:$0xff]  ;;  %v474_v34 = vld [vmem:[%s3488_s17 + $0x390] sm:$0xff]  ;;  %v415_v36 = vld [vmem:[%s3488_s17 + $0x1b8] sm:$0xff]  ;;  %v2339_v39 = vpack.c.bf16 %v410_v31, %v408_v30 }
  0xdb   : > { %2324 = vmatpush1.bf16.msra.mxu0 %v2323_v49  ;;  %955 = vmatprep.mubr.f32.mxu0 %v3627_v24  ;;  %v477_v37 = vld [vmem:[%s3488_s17 + $0x3a8] sm:$0xff]  ;;  %v479_v38 = vld [vmem:[%s3488_s17 + $0x3b8] sm:$0xff]  ;;  %v2403_v40 = vpack.c.bf16 %v474_v34, %v472_v32  ;;  %v2341_v41 = vpack.c.bf16 %v415_v36, %v413_v35  ;;  %v412_v42 = vld [vmem:[%s3488_s17 + $0x1a0] sm:$0xff]  ;;  %v3687_v32 = vrot.slane %v3630_v25, %v3669_v12 }
  0xdc   : > { %2388 = vmatpush1.bf16.msra.mxu1 %v2387_v50  ;;  %2326 = vmatprep.subr.bf16.mxu0 %v2325_v51  ;;  %v414_v43 = vld [vmem:[%s3488_s17 + $0x1b0] sm:$0xff]  ;;  %v476_v44 = vld [vmem:[%s3488_s17 + $0x3a0] sm:$0xff]  ;;  %v2405_v45 = vpack.c.bf16 %v479_v38, %v477_v37  ;;  %v417_v47 = vld [vmem:[%s3488_s17 + $0x1c8] sm:$0xff] }
  0xdd   : > { %2390 = vmatprep.subr.bf16.mxu1 %v2389_v55  ;;  %1037 = vmatprep.mubr.f32.mxu1 %v3634_v27  ;;  %v478_v46 = vld [vmem:[%s3488_s17 + $0x3b0] sm:$0xff]  ;;  %v419_v49 = vld [vmem:[%s3488_s17 + $0x1d8] sm:$0xff]  ;;  %v481_v50 = vld [vmem:[%s3488_s17 + $0x3c8] sm:$0xff]  ;;  %v2343_v52 = vpack.c.bf16 %v414_v43, %v412_v42 }
  0xde   : > { %v483_v51 = vld [vmem:[%s3488_s17 + $0x3d8] sm:$0xff]  ;;  %v2407_v53 = vpack.c.bf16 %v478_v46, %v476_v44  ;;  %v2345_v54 = vpack.c.bf16 %v419_v49, %v417_v47  ;;  %v416_v55 = vld [vmem:[%s3488_s17 + $0x1c0] sm:$0xff]  ;;  %v418_v56 = vld [vmem:[%s3488_s17 + $0x1d0] sm:$0xff] }
  0xdf   : > { %2328 = vmatpush1.bf16.msra.mxu0 %v2327_v62  ;;  %v480_v57 = vld [vmem:[%s3488_s17 + $0x3c0] sm:$0xff]  ;;  %v2409_v58 = vpack.c.bf16 %v483_v51, %v481_v50  ;;  %v482_v59 = vld [vmem:[%s3488_s17 + $0x3d0] sm:$0xff]  ;;  %v421_v60 = vld [vmem:[%s3488_s17 + $0x1e8] sm:$0xff]  ;;  %v2347_v1 = vpack.c.bf16 %v418_v56, %v416_v55 }
  0xe0   : > { %2392 = vmatpush1.bf16.msra.mxu1 %v2391_v63  ;;  %2330 = vmatprep.subr.bf16.mxu0 %v2329_v0  ;;  %v423_v62 = vld [vmem:[%s3488_s17 + $0x1f8] sm:$0xff]  ;;  %v485_v63 = vld [vmem:[%s3488_s17 + $0x3e8] sm:$0xff]  ;;  %v2411_v2 = vpack.c.bf16 %v482_v59, %v480_v57  ;;  %v422_v5 = vld [vmem:[%s3488_s17 + $0x1f0] sm:$0xff] }
  0xe1   : > { %2394 = vmatprep.subr.bf16.mxu1 %v2393_v4  ;;  %v487_v0 = vld [vmem:[%s3488_s17 + $0x3f8] sm:$0xff]  ;;  %v2349_v3 = vpack.c.bf16 %v423_v62, %v421_v60  ;;  %v420_v4 = vld [vmem:[%s3488_s17 + $0x1e0] sm:$0xff]  ;;  %v486_v8 = vld [vmem:[%s3488_s17 + $0x3f0] sm:$0xff] }
  0xe2   : > { %v484_v6 = vld [vmem:[%s3488_s17 + $0x3e0] sm:$0xff]  ;;  %v2413_v7 = vpack.c.bf16 %v487_v0, %v485_v63  ;;  %v489_v9 = vld [vmem:[%s3488_s17 + $0x408] sm:$0xff]  ;;  %v2351_v15 = vpack.c.bf16 %v422_v5, %v420_v4  ;;  %v490_v19 = vld [vmem:[%s3488_s17 + $0x410] sm:$0xff] }
  0xe3   : > { %2332 = vmatpush1.bf16.msra.mxu0 %v2331_v11  ;;  %v491_v11 = vld [vmem:[%s3488_s17 + $0x418] sm:$0xff]  ;;  %v2415_v16 = vpack.c.bf16 %v486_v8, %v484_v6  ;;  %v552_v20 = vld [vmem:[%s3488_s17 + $0x600] sm:$0xff]  ;;  %v554_v23 = vld [vmem:[%s3488_s17 + $0x610] sm:$0xff] }
  0xe4   : > { %2396 = vmatpush1.bf16.msra.mxu1 %v2395_v13  ;;  %2334 = vmatprep.subr.bf16.mxu0 %v2333_v14  ;;  %v553_v13 = vld [vmem:[%s3488_s17 + $0x608] sm:$0xff]  ;;  %v555_v14 = vld [vmem:[%s3488_s17 + $0x618] sm:$0xff]  ;;  %v2417_v17 = vpack.c.bf16 %v491_v11, %v489_v9  ;;  %v2483_v34 = vpack.c.bf16 %v554_v23, %v552_v20  ;;  %v492_v36 = vld [vmem:[%s3488_s17 + $0x420] sm:$0xff] }
  0xe5   : > { %2398 = vmatprep.subr.bf16.mxu1 %v2397_v18  ;;  %v488_v18 = vld [vmem:[%s3488_s17 + $0x400] sm:$0xff]  ;;  %v2481_v22 = vpack.c.bf16 %v555_v14, %v553_v13  ;;  %v557_v30 = vld [vmem:[%s3488_s17 + $0x628] sm:$0xff]  ;;  %v559_v31 = vld [vmem:[%s3488_s17 + $0x638] sm:$0xff] }
  0xe6   : > { %v494_v37 = vld [vmem:[%s3488_s17 + $0x430] sm:$0xff]  ;;  %v2485_v38 = vpack.c.bf16 %v559_v31, %v557_v30  ;;  %v561_v25 = vld [vmem:[%s3488_s17 + $0x648] sm:$0xff]  ;;  %v563_v42 = vld [vmem:[%s3488_s17 + $0x658] sm:$0xff] }
  0xe7   : > { %2336 = vmatpush1.bf16.msra.mxu0 %v2335_v26  ;;  %v493_v26 = vld [vmem:[%s3488_s17 + $0x428] sm:$0xff]  ;;  %v2423_v43 = vpack.c.bf16 %v494_v37, %v492_v36  ;;  %v496_v46 = vld [vmem:[%s3488_s17 + $0x440] sm:$0xff]  ;;  %v498_v47 = vld [vmem:[%s3488_s17 + $0x450] sm:$0xff]  ;;  %v2489_v50 = vpack.c.bf16 %v563_v42, %v561_v25 }
  0xe8   : > { %2400 = vmatpush1.bf16.msra.mxu1 %v2399_v28  ;;  %2338 = vmatprep.subr.bf16.mxu0 %v2337_v29  ;;  %v495_v28 = vld [vmem:[%s3488_s17 + $0x438] sm:$0xff]  ;;  %v3681_v29 = vrot.slane %v3621_v21, %v3669_v12  ;;  %v556_v21 = vld [vmem:[%s3488_s17 + $0x620] sm:$0xff]  ;;  %v562_v51 = vld [vmem:[%s3488_s17 + $0x650] sm:$0xff]  ;;  %v2427_v56 = vpack.c.bf16 %v498_v47, %v496_v46 }
  0xe9   : > { %2402 = vmatprep.subr.bf16.mxu1 %v2401_v33  ;;  %v2419_v33 = vpack.c.bf16 %v490_v19, %v488_v18  ;;  %v2421_v35 = vpack.c.bf16 %v495_v28, %v493_v26  ;;  %v560_v49 = vld [vmem:[%s3488_s17 + $0x640] sm:$0xff]  ;;  %v567_v55 = vld [vmem:[%s3488_s17 + $0x678] sm:$0xff]  ;;  %v502_v60 = vld [vmem:[%s3488_s17 + $0x470] sm:$0xff] }
  0xea   : > { %v2491_v57 = vpack.c.bf16 %v562_v51, %v560_v49  ;;  %v500_v59 = vld [vmem:[%s3488_s17 + $0x460] sm:$0xff]  ;;  %v566_v0 = vld [vmem:[%s3488_s17 + $0x670] sm:$0xff]  ;;  %v571_v4 = vld [vmem:[%s3488_s17 + $0x698] sm:$0xff] }
  0xeb   : > { %2340 = vmatpush1.bf16.msra.mxu0 %v2339_v39  ;;  %v558_v39 = vld [vmem:[%s3488_s17 + $0x630] sm:$0xff]  ;;  %v564_v62 = vld [vmem:[%s3488_s17 + $0x660] sm:$0xff]  ;;  %v2431_v5 = vpack.c.bf16 %v502_v60, %v500_v59  ;;  %v575_v18 = vld [vmem:[%s3488_s17 + $0x6b8] sm:$0xff] }
  0xec   : > { %2404 = vmatpush1.bf16.msra.mxu1 %v2403_v40  ;;  %2342 = vmatprep.subr.bf16.mxu0 %v2341_v41  ;;  %v497_v40 = vld [vmem:[%s3488_s17 + $0x448] sm:$0xff]  ;;  %v499_v41 = vld [vmem:[%s3488_s17 + $0x458] sm:$0xff]  ;;  %v2487_v44 = vpack.c.bf16 %v558_v39, %v556_v21  ;;  %v2495_v6 = vpack.c.bf16 %v566_v0, %v564_v62  ;;  %v504_v8 = vld [vmem:[%s3488_s17 + $0x480] sm:$0xff] }
  0xed   : > { %2406 = vmatprep.subr.bf16.mxu1 %v2405_v45  ;;  %v2425_v45 = vpack.c.bf16 %v499_v41, %v497_v40  ;;  %v506_v9 = vld [vmem:[%s3488_s17 + $0x490] sm:$0xff]  ;;  %v568_v11 = vld [vmem:[%s3488_s17 + $0x680] sm:$0xff]  ;;  %v579_v36 = vld [vmem:[%s3488_s17 + $0x6d8] sm:$0xff] }
  0xee   : > { %v570_v14 = vld [vmem:[%s3488_s17 + $0x690] sm:$0xff]  ;;  %v2435_v19 = vpack.c.bf16 %v506_v9, %v504_v8  ;;  %v508_v23 = vld [vmem:[%s3488_s17 + $0x4a0] sm:$0xff]  ;;  %v517_v42 = vld [vmem:[%s3488_s17 + $0x4e8] sm:$0xff] }
  0xef   : > { %2344 = vmatpush1.bf16.msra.mxu0 %v2343_v52  ;;  %v501_v52 = vld [vmem:[%s3488_s17 + $0x468] sm:$0xff]  ;;  %v2499_v20 = vpack.c.bf16 %v570_v14, %v568_v11  ;;  %v510_v26 = vld [vmem:[%s3488_s17 + $0x4b0] sm:$0xff]  ;;  %v572_v28 = vld [vmem:[%s3488_s17 + $0x6a0] sm:$0xff] }
  0xf0   : > { %2408 = vmatpush1.bf16.msra.mxu1 %v2407_v53  ;;  %2346 = vmatprep.subr.bf16.mxu0 %v2345_v54  ;;  %v503_v53 = vld [vmem:[%s3488_s17 + $0x478] sm:$0xff]  ;;  %v565_v54 = vld [vmem:[%s3488_s17 + $0x668] sm:$0xff]  ;;  %v574_v31 = vld [vmem:[%s3488_s17 + $0x6b0] sm:$0xff]  ;;  %v2439_v37 = vpack.c.bf16 %v510_v26, %v508_v23 }
  0xf1   : > { %2410 = vmatprep.subr.bf16.mxu1 %v2409_v58  ;;  %v2429_v58 = vpack.c.bf16 %v503_v53, %v501_v52  ;;  %v2493_v63 = vpack.c.bf16 %v567_v55, %v565_v54  ;;  %v512_v21 = vld [vmem:[%s3488_s17 + $0x4c0] sm:$0xff]  ;;  %v2503_v39 = vpack.c.bf16 %v574_v31, %v572_v28  ;;  %v578_v25 = vld [vmem:[%s3488_s17 + $0x6d0] sm:$0xff]  ;;  %v581_v47 = vld [vmem:[%s3488_s17 + $0x6e8] sm:$0xff] }
  0xf2   : > { %v576_v41 = vld [vmem:[%s3488_s17 + $0x6c0] sm:$0xff]  ;;  %v583_v49 = vld [vmem:[%s3488_s17 + $0x6f8] sm:$0xff]  ;;  %v582_v59 = vld [vmem:[%s3488_s17 + $0x6f0] sm:$0xff] }
  0xf3   : > { %2348 = vmatpush1.bf16.msra.mxu0 %v2347_v1  ;;  %v505_v1 = vld [vmem:[%s3488_s17 + $0x488] sm:$0xff]  ;;  %v3741_v46 = vld [vmem:[%s3495_s12 + $0x6] sm:$0x3]  ;;  %v2507_v53 = vpack.c.bf16 %v578_v25, %v576_v41  ;;  %v523_v62 = vld [vmem:[%s3488_s17 + $0x518] sm:$0xff] }
  0xf4   : > { %2412 = vmatpush1.bf16.msra.mxu1 %v2411_v2  ;;  %2350 = vmatprep.subr.bf16.mxu0 %v2349_v3  ;;  %v507_v2 = vld [vmem:[%s3488_s17 + $0x498] sm:$0xff]  ;;  %v569_v3 = vld [vmem:[%s3488_s17 + $0x688] sm:$0xff]  ;;  %v3751_v51 = vrot.slane %v3741_v46, %v3612_v10  ;;  %v516_v55 = vld [vmem:[%s3488_s17 + $0x4e0] sm:$0xff] }
  0xf5   : > { %2414 = vmatprep.subr.bf16.mxu1 %v2413_v7  ;;  %v2433_v7 = vpack.c.bf16 %v507_v2, %v505_v1  ;;  %v2497_v13 = vpack.c.bf16 %v571_v4, %v569_v3  ;;  %v521_v60 = vld [vmem:[%s3488_s17 + $0x508] sm:$0xff]  ;;  %v587_v0 = vld [vmem:[%s3488_s17 + $0x718] sm:$0xff]  ;;  %v520_v4 = vld [vmem:[%s3488_s17 + $0x500] sm:$0xff] }
  0xf6   : > { %v2449_v3 = vpack.c.bf16 %v523_v62, %v521_v60  ;;  %v586_v8 = vld [vmem:[%s3488_s17 + $0x710] sm:$0xff]  ;;  %v525_v9 = vld [vmem:[%s3488_s17 + $0x528] sm:$0xff]  ;;  %v527_v11 = vld [vmem:[%s3488_s17 + $0x538] sm:$0xff] }
  0xf7   : > { %2352 = vmatpush1.bf16.msra.mxu0 %v2351_v15  ;;  %v509_v15 = vld [vmem:[%s3488_s17 + $0x4a8] sm:$0xff]  ;;  %v591_v14 = vld [vmem:[%s3488_s17 + $0x738] sm:$0xff]  ;;  %v590_v23 = vld [vmem:[%s3488_s17 + $0x730] sm:$0xff] }
  0xf8   : > { %2416 = vmatpush1.bf16.msra.mxu1 %v2415_v16  ;;  %2418 = vmatprep.subr.bf16.mxu0 %v2417_v17  ;;  %v511_v16 = vld [vmem:[%s3488_s17 + $0x4b8] sm:$0xff]  ;;  %v573_v17 = vld [vmem:[%s3488_s17 + $0x6a8] sm:$0xff] }
  0xf9   : > { %2482 = vmatprep.subr.bf16.mxu1 %v2481_v22  ;;  %v2437_v22 = vpack.c.bf16 %v511_v16, %v509_v15  ;;  %v2501_v30 = vpack.c.bf16 %v575_v18, %v573_v17  ;;  %v2453_v17 = vpack.c.bf16 %v527_v11, %v525_v9  ;;  %v524_v18 = vld [vmem:[%s3488_s17 + $0x520] sm:$0xff]  ;;  %v529_v26 = vld [vmem:[%s3488_s17 + $0x548] sm:$0xff]  ;;  %v531_v28 = vld [vmem:[%s3488_s17 + $0x558] sm:$0xff] }
  0xfa   : > { %956 = vmatmul.mubr.f32.vlgmr.msra.gmra.mrb[0].mxu0 %v3681_v29  ;;  %v595_v31 = vld [vmem:[%s3488_s17 + $0x758] sm:$0xff]  ;;  %v597_v25 = vld [vmem:[%s3488_s17 + $0x768] sm:$0xff] }
  0xfb   : > { %1038 = vmatmul.mubr.f32.vlgmr.msra.gmra.mrb[0].mxu1 %v3687_v32  ;;  %2420 = vmatpush1.bf16.msra.mxu0 %v2419_v33  ;;  %v513_v33 = vld [vmem:[%s3488_s17 + $0x4c8] sm:$0xff]  ;;  %v535_v41 = vld [vmem:[%s3488_s17 + $0x578] sm:$0xff] }
  0xfc   : > { %2484 = vmatpush1.bf16.msra.mxu1 %v2483_v34  ;;  %2422 = vmatprep.subr.bf16.mxu0 %v2421_v35  ;;  %v515_v34 = vld [vmem:[%s3488_s17 + $0x4d8] sm:$0xff]  ;;  %v577_v35 = vld [vmem:[%s3488_s17 + $0x6c8] sm:$0xff] }
  0xfd   : > { %2486 = vmatprep.subr.bf16.mxu1 %v2485_v38  ;;  %v514_v38 = vld [vmem:[%s3488_s17 + $0x4d0] sm:$0xff]  ;;  %v2441_v40 = vpack.c.bf16 %v515_v34, %v513_v33  ;;  %1201 = vmatprep.mubr.f32.mxu1 %v3751_v51 }
  0xfe   : > { %v2443_v52 = vpack.c.bf16 %v514_v38, %v512_v21  ;;  %v592_v21 = vld [vmem:[%s3488_s17 + $0x740] sm:$0xff] }
  0xff   : > { %2424 = vmatpush1.bf16.msra.mxu0 %v2423_v43  ;;  %v2505_v43 = vpack.c.bf16 %v579_v36, %v577_v35  ;;  %v2457_v35 = vpack.c.bf16 %v531_v28, %v529_v26  ;;  %v528_v36 = vld [vmem:[%s3488_s17 + $0x540] sm:$0xff] }
 0x100   : > { %2488 = vmatpush1.bf16.msra.mxu1 %v2487_v44  ;;  %2426 = vmatprep.subr.bf16.mxu0 %v2425_v45  ;;  %v519_v44 = vld [vmem:[%s3488_s17 + $0x4f8] sm:$0xff]  ;;  %v3738_v45 = vld [vmem:[%s3495_s12 + $0x4] sm:$0x3] }
 0x101   : > { %2490 = vmatprep.subr.bf16.mxu1 %v2489_v50  ;;  %v3747_v50 = vrot.slane %v3738_v45, %v3612_v10  ;;  %v2445_v54 = vpack.c.bf16 %v519_v44, %v517_v42  ;;  %v599_v42 = vld [vmem:[%s3488_s17 + $0x778] sm:$0xff] }
 0x103   : > { %2428 = vmatpush1.bf16.msra.mxu0 %v2427_v56  ;;  %v518_v56 = vld [vmem:[%s3488_s17 + $0x4f0] sm:$0xff]  ;;  %1119 = vmatprep.mubr.f32.mxu0 %v3747_v50 }
 0x104   : > { %2492 = vmatpush1.bf16.msra.mxu1 %v2491_v57  ;;  %2430 = vmatprep.subr.bf16.mxu0 %v2429_v58  ;;  %v580_v57 = vld [vmem:[%s3488_s17 + $0x6e0] sm:$0xff]  ;;  %v2509_v58 = vpack.c.bf16 %v583_v49, %v581_v47  ;;  %v2447_v1 = vpack.c.bf16 %v518_v56, %v516_v55  ;;  %v598_v55 = vld [vmem:[%s3488_s17 + $0x770] sm:$0xff]  ;;  %v537_v56 = vld [vmem:[%s3488_s17 + $0x588] sm:$0xff] }
 0x105   : > { %2494 = vmatprep.subr.bf16.mxu1 %v2493_v63  ;;  %v585_v63 = vld [vmem:[%s3488_s17 + $0x708] sm:$0xff]  ;;  %v2511_v2 = vpack.c.bf16 %v582_v59, %v580_v57  ;;  %v532_v49 = vld [vmem:[%s3488_s17 + $0x560] sm:$0xff]  ;;  %v539_v57 = vld [vmem:[%s3488_s17 + $0x598] sm:$0xff] }
 0x106   : > { %v603_v59 = vld [vmem:[%s3488_s17 + $0x798] sm:$0xff] }
 0x107   : > { %2432 = vmatpush1.bf16.msra.mxu0 %v2431_v5  ;;  %v522_v5 = vld [vmem:[%s3488_s17 + $0x510] sm:$0xff] }
 0x108   : > { %2496 = vmatpush1.bf16.msra.mxu1 %v2495_v6  ;;  %2434 = vmatprep.subr.bf16.mxu0 %v2433_v7  ;;  %v584_v6 = vld [vmem:[%s3488_s17 + $0x700] sm:$0xff]  ;;  %v2513_v7 = vpack.c.bf16 %v587_v0, %v585_v63  ;;  %v2451_v15 = vpack.c.bf16 %v522_v5, %v520_v4  ;;  %v2465_v63 = vpack.c.bf16 %v539_v57, %v537_v56  ;;  %v602_v4 = vld [vmem:[%s3488_s17 + $0x790] sm:$0xff]  ;;  %v541_v5 = vld [vmem:[%s3488_s17 + $0x5a8] sm:$0xff] }
 0x109   : > { %2498 = vmatprep.subr.bf16.mxu1 %v2497_v13  ;;  %v589_v13 = vld [vmem:[%s3488_s17 + $0x728] sm:$0xff]  ;;  %v2515_v16 = vpack.c.bf16 %v586_v8, %v584_v6  ;;  %v536_v0 = vld [vmem:[%s3488_s17 + $0x580] sm:$0xff]  ;;  %v543_v6 = vld [vmem:[%s3488_s17 + $0x5b8] sm:$0xff] }
 0x10a   : > { %v607_v8 = vld [vmem:[%s3488_s17 + $0x7b8] sm:$0xff] }
 0x10b   : > { %2436 = vmatpush1.bf16.msra.mxu0 %v2435_v19  ;;  %v526_v19 = vld [vmem:[%s3488_s17 + $0x530] sm:$0xff] }
 0x10c   : > { %2500 = vmatpush1.bf16.msra.mxu1 %v2499_v20  ;;  %2438 = vmatprep.subr.bf16.mxu0 %v2437_v22  ;;  %v588_v20 = vld [vmem:[%s3488_s17 + $0x720] sm:$0xff]  ;;  %v2517_v22 = vpack.c.bf16 %v591_v14, %v589_v13  ;;  %v2455_v33 = vpack.c.bf16 %v526_v19, %v524_v18  ;;  %v2469_v13 = vpack.c.bf16 %v543_v6, %v541_v5  ;;  %v606_v18 = vld [vmem:[%s3488_s17 + $0x7b0] sm:$0xff]  ;;  %v545_v19 = vld [vmem:[%s3488_s17 + $0x5c8] sm:$0xff] }
 0x10d   : > { %2502 = vmatprep.subr.bf16.mxu1 %v2501_v30  ;;  %v593_v30 = vld [vmem:[%s3488_s17 + $0x748] sm:$0xff]  ;;  %v2519_v34 = vpack.c.bf16 %v590_v23, %v588_v20  ;;  %v540_v14 = vld [vmem:[%s3488_s17 + $0x5a0] sm:$0xff]  ;;  %v547_v20 = vld [vmem:[%s3488_s17 + $0x5d8] sm:$0xff]  ;;  %v3841_v6 = vrot.slane %v3741_v46, %v3669_v12 }
 0x10e   : > { %v2521_v38 = vpack.c.bf16 %v595_v31, %v593_v30  ;;  %v611_v23 = vld [vmem:[%s3488_s17 + $0x7d8] sm:$0xff]  ;;  %v2473_v30 = vpack.c.bf16 %v547_v20, %v545_v19  ;;  %v544_v31 = vld [vmem:[%s3488_s17 + $0x5c0] sm:$0xff]  ;;  %v625_v46 = vld [vmem:[%s3488_s17 + $0x848] sm:$0xff] }
 0x10f   : > { %2440 = vmatpush1.bf16.msra.mxu0 %v2439_v37  ;;  %v530_v37 = vld [vmem:[%s3488_s17 + $0x550] sm:$0xff]  ;;  %v687_v5 = vld [vmem:[%s3488_s17 + $0xa38] sm:$0xff]  ;;  %v689_v20 = vld [vmem:[%s3488_s17 + $0xa48] sm:$0xff] }
 0x110   : > { %2504 = vmatpush1.bf16.msra.mxu1 %v2503_v39  ;;  %2442 = vmatprep.subr.bf16.mxu0 %v2441_v40  ;;  %v594_v39 = vld [vmem:[%s3488_s17 + $0x750] sm:$0xff]  ;;  %v533_v40 = vld [vmem:[%s3488_s17 + $0x568] sm:$0xff] }
 0x111   : > { %2506 = vmatprep.subr.bf16.mxu1 %v2505_v43  ;;  %v2459_v43 = vpack.c.bf16 %v530_v37, %v528_v36  ;;  %v2523_v44 = vpack.c.bf16 %v594_v39, %v592_v21  ;;  %v2461_v47 = vpack.c.bf16 %v535_v41, %v533_v40  ;;  %v610_v36 = vld [vmem:[%s3488_s17 + $0x7d0] sm:$0xff]  ;;  %v549_v37 = vld [vmem:[%s3488_s17 + $0x5e8] sm:$0xff]  ;;  %v551_v21 = vld [vmem:[%s3488_s17 + $0x5f8] sm:$0xff] }
 0x112   : > { %v615_v39 = vld [vmem:[%s3488_s17 + $0x7f8] sm:$0xff] }
 0x113   : > { %2444 = vmatpush1.bf16.msra.mxu0 %v2443_v52  ;;  %v534_v52 = vld [vmem:[%s3488_s17 + $0x570] sm:$0xff] }
 0x114   : > { %2508 = vmatpush1.bf16.msra.mxu1 %v2507_v53  ;;  %2446 = vmatprep.subr.bf16.mxu0 %v2445_v54  ;;  %v596_v53 = vld [vmem:[%s3488_s17 + $0x760] sm:$0xff]  ;;  %v2525_v54 = vpack.c.bf16 %v599_v42, %v597_v25  ;;  %v2463_v60 = vpack.c.bf16 %v534_v52, %v532_v49  ;;  %v2477_v25 = vpack.c.bf16 %v551_v21, %v549_v37  ;;  %v614_v49 = vld [vmem:[%s3488_s17 + $0x7f0] sm:$0xff]  ;;  %v617_v52 = vld [vmem:[%s3488_s17 + $0x808] sm:$0xff] }
 0x115   : > { %2510 = vmatprep.subr.bf16.mxu1 %v2509_v58  ;;  %v601_v58 = vld [vmem:[%s3488_s17 + $0x788] sm:$0xff]  ;;  %v2527_v62 = vpack.c.bf16 %v598_v55, %v596_v53  ;;  %v548_v42 = vld [vmem:[%s3488_s17 + $0x5e0] sm:$0xff]  ;;  %v619_v53 = vld [vmem:[%s3488_s17 + $0x818] sm:$0xff] }
 0x116   : > { %v683_v55 = vld [vmem:[%s3488_s17 + $0xa18] sm:$0xff]  ;;  %v629_v37 = vld [vmem:[%s3488_s17 + $0x868] sm:$0xff] }
 0x117   : > { %2448 = vmatpush1.bf16.msra.mxu0 %v2447_v1  ;;  %v538_v1 = vld [vmem:[%s3488_s17 + $0x590] sm:$0xff]  ;;  %v631_v21 = vld [vmem:[%s3488_s17 + $0x878] sm:$0xff] }
 0x118   : > { %2512 = vmatpush1.bf16.msra.mxu1 %v2511_v2  ;;  %2450 = vmatprep.subr.bf16.mxu0 %v2449_v3  ;;  %v600_v2 = vld [vmem:[%s3488_s17 + $0x780] sm:$0xff]  ;;  %v2529_v3 = vpack.c.bf16 %v603_v59, %v601_v58  ;;  %v2467_v9 = vpack.c.bf16 %v538_v1, %v536_v0  ;;  %v2545_v58 = vpack.c.bf16 %v619_v53, %v617_v52  ;;  %v682_v0 = vld [vmem:[%s3488_s17 + $0xa10] sm:$0xff]  ;;  %v621_v1 = vld [vmem:[%s3488_s17 + $0x828] sm:$0xff] }
 0x119   : > { %2514 = vmatprep.subr.bf16.mxu1 %v2513_v7  ;;  %v605_v7 = vld [vmem:[%s3488_s17 + $0x7a8] sm:$0xff]  ;;  %v2531_v11 = vpack.c.bf16 %v602_v4, %v600_v2  ;;  %v616_v59 = vld [vmem:[%s3488_s17 + $0x800] sm:$0xff]  ;;  %v623_v2 = vld [vmem:[%s3488_s17 + $0x838] sm:$0xff] }
 0x11a   : > { %v685_v4 = vld [vmem:[%s3488_s17 + $0xa28] sm:$0xff]  ;;  %v635_v53 = vld [vmem:[%s3488_s17 + $0x898] sm:$0xff] }
 0x11b   : > { %2452 = vmatpush1.bf16.msra.mxu0 %v2451_v15  ;;  %v542_v15 = vld [vmem:[%s3488_s17 + $0x5b0] sm:$0xff]  ;;  %v633_v52 = vld [vmem:[%s3488_s17 + $0x888] sm:$0xff] }
 0x11c   : > { %2516 = vmatpush1.bf16.msra.mxu1 %v2515_v16  ;;  %2454 = vmatprep.subr.bf16.mxu0 %v2453_v17  ;;  %v604_v16 = vld [vmem:[%s3488_s17 + $0x7a0] sm:$0xff]  ;;  %v2533_v17 = vpack.c.bf16 %v607_v8, %v605_v7  ;;  %v2471_v26 = vpack.c.bf16 %v542_v15, %v540_v14  ;;  %v3847_v14 = vld [vmem:[%s3495_s12 + $0x8] sm:$0x3]  ;;  %v3850_v15 = vld [vmem:[%s3495_s12 + $0xa] sm:$0x3] }
 0x11d   : > { %2518 = vmatprep.subr.bf16.mxu1 %v2517_v22  ;;  %v609_v22 = vld [vmem:[%s3488_s17 + $0x7c8] sm:$0xff]  ;;  %v2535_v28 = vpack.c.bf16 %v606_v18, %v604_v16  ;;  %v620_v8 = vld [vmem:[%s3488_s17 + $0x820] sm:$0xff]  ;;  %v2613_v16 = vpack.c.bf16 %v687_v5, %v685_v4  ;;  %v627_v18 = vld [vmem:[%s3488_s17 + $0x858] sm:$0xff]  ;;  %v3857_v19 = vrot.slane %v3847_v14, %v3612_v10 }
 0x11e   : > { %v701_v4 = vld [vmem:[%s3488_s17 + $0xaa8] sm:$0xff]  ;;  %v703_v5 = vld [vmem:[%s3488_s17 + $0xab8] sm:$0xff] }
 0x11f   : > { %2456 = vmatpush1.bf16.msra.mxu0 %v2455_v33  ;;  %v546_v33 = vld [vmem:[%s3488_s17 + $0x5d0] sm:$0xff] }
 0x120   : > { %2520 = vmatpush1.bf16.msra.mxu1 %v2519_v34  ;;  %2458 = vmatprep.subr.bf16.mxu0 %v2457_v35  ;;  %v608_v34 = vld [vmem:[%s3488_s17 + $0x7c0] sm:$0xff]  ;;  %v2537_v35 = vpack.c.bf16 %v611_v23, %v609_v22  ;;  %v2475_v40 = vpack.c.bf16 %v546_v33, %v544_v31  ;;  %v691_v22 = vld [vmem:[%s3488_s17 + $0xa58] sm:$0xff]  ;;  %v3864_v23 = vrot.slane %v3850_v15, %v3612_v10  ;;  %v626_v33 = vld [vmem:[%s3488_s17 + $0x850] sm:$0xff] }
 0x121   : > { %2522 = vmatprep.subr.bf16.mxu1 %v2521_v38  ;;  %v613_v38 = vld [vmem:[%s3488_s17 + $0x7e8] sm:$0xff]  ;;  %v2539_v41 = vpack.c.bf16 %v610_v36, %v608_v34  ;;  %v624_v31 = vld [vmem:[%s3488_s17 + $0x840] sm:$0xff]  ;;  %v690_v36 = vld [vmem:[%s3488_s17 + $0xa50] sm:$0xff] }
 0x122   : > { %v688_v34 = vld [vmem:[%s3488_s17 + $0xa40] sm:$0xff] }
 0x123   : > { %2460 = vmatpush1.bf16.msra.mxu0 %v2459_v43  ;;  %v550_v43 = vld [vmem:[%s3488_s17 + $0x5f0] sm:$0xff] }
 0x124   : > { %2524 = vmatpush1.bf16.msra.mxu1 %v2523_v44  ;;  %2462 = vmatprep.subr.bf16.mxu0 %v2461_v47  ;;  %v612_v44 = vld [vmem:[%s3488_s17 + $0x7e0] sm:$0xff]  ;;  %v2541_v47 = vpack.c.bf16 %v615_v39, %v613_v38  ;;  %v2479_v56 = vpack.c.bf16 %v550_v43, %v548_v42  ;;  %v693_v38 = vld [vmem:[%s3488_s17 + $0xa68] sm:$0xff]  ;;  %v695_v39 = vld [vmem:[%s3488_s17 + $0xa78] sm:$0xff] }
 0x125   : > { %2526 = vmatprep.subr.bf16.mxu1 %v2525_v54  ;;  %v681_v54 = vld [vmem:[%s3488_s17 + $0xa08] sm:$0xff]  ;;  %v2543_v57 = vpack.c.bf16 %v614_v49, %v612_v44  ;;  %v628_v42 = vld [vmem:[%s3488_s17 + $0x860] sm:$0xff]  ;;  %v630_v43 = vld [vmem:[%s3488_s17 + $0x870] sm:$0xff] }
 0x126   : > { %v692_v44 = vld [vmem:[%s3488_s17 + $0xa60] sm:$0xff]  ;;  %v694_v49 = vld [vmem:[%s3488_s17 + $0xa70] sm:$0xff] }
 0x127   : > { %2464 = vmatpush1.bf16.msra.mxu0 %v2463_v60  ;;  %v618_v60 = vld [vmem:[%s3488_s17 + $0x810] sm:$0xff] }
 0x128   : > { %2528 = vmatpush1.bf16.msra.mxu1 %v2527_v62  ;;  %2466 = vmatprep.subr.bf16.mxu0 %v2465_v63  ;;  %v680_v62 = vld [vmem:[%s3488_s17 + $0xa00] sm:$0xff]  ;;  %v2609_v63 = vpack.c.bf16 %v683_v55, %v681_v54  ;;  %v2547_v7 = vpack.c.bf16 %v618_v60, %v616_v59  ;;  %v697_v54 = vld [vmem:[%s3488_s17 + $0xa88] sm:$0xff]  ;;  %v699_v55 = vld [vmem:[%s3488_s17 + $0xa98] sm:$0xff] }
 0x129   : > { %2530 = vmatprep.subr.bf16.mxu1 %v2529_v3  ;;  %v3835_v3 = vrot.slane %v3738_v45, %v3669_v12  ;;  %v2549_v45 = vpack.c.bf16 %v623_v2, %v621_v1  ;;  %v632_v59 = vld [vmem:[%s3488_s17 + $0x880] sm:$0xff]  ;;  %v634_v60 = vld [vmem:[%s3488_s17 + $0x890] sm:$0xff]  ;;  %v637_v1 = vld [vmem:[%s3488_s17 + $0x8a8] sm:$0xff] }
 0x12a   : > { %v639_v2 = vld [vmem:[%s3488_s17 + $0x8b8] sm:$0xff] }
 0x12b   : > { %2468 = vmatpush1.bf16.msra.mxu0 %v2467_v9  ;;  %v622_v9 = vld [vmem:[%s3488_s17 + $0x830] sm:$0xff] }
 0x12c   : > { %2532 = vmatpush1.bf16.msra.mxu1 %v2531_v11  ;;  %2470 = vmatprep.subr.bf16.mxu0 %v2469_v13  ;;  %v2611_v11 = vpack.c.bf16 %v682_v0, %v680_v62  ;;  %v684_v13 = vld [vmem:[%s3488_s17 + $0xa20] sm:$0xff]  ;;  %v698_v0 = vld [vmem:[%s3488_s17 + $0xa90] sm:$0xff] }
 0x12d   : > { %2534 = vmatprep.subr.bf16.mxu1 %v2533_v17  ;;  %v686_v17 = vld [vmem:[%s3488_s17 + $0xa30] sm:$0xff]  ;;  %v696_v62 = vld [vmem:[%s3488_s17 + $0xa80] sm:$0xff] }
 0x12f   : > { %2472 = vmatpush1.bf16.msra.mxu0 %v2471_v26  ;;  %v2551_v26 = vpack.c.bf16 %v622_v9, %v620_v8  ;;  %v2627_v8 = vpack.c.bf16 %v698_v0, %v696_v62  ;;  %v2565_v9 = vpack.c.bf16 %v639_v2, %v637_v1  ;;  %v712_v62 = vld [vmem:[%s3488_s17 + $0xb00] sm:$0xff]  ;;  %v714_v0 = vld [vmem:[%s3488_s17 + $0xb10] sm:$0xff]  ;;  %v653_v1 = vld [vmem:[%s3488_s17 + $0x928] sm:$0xff] }
 0x130   : > { %2536 = vmatpush1.bf16.msra.mxu1 %v2535_v28  ;;  %2474 = vmatprep.subr.bf16.mxu0 %v2473_v30  ;;  %v2615_v28 = vpack.c.bf16 %v686_v17, %v684_v13  ;;  %v2553_v30 = vpack.c.bf16 %v627_v18, %v625_v46  ;;  %v700_v13 = vld [vmem:[%s3488_s17 + $0xaa0] sm:$0xff]  ;;  %v702_v17 = vld [vmem:[%s3488_s17 + $0xab0] sm:$0xff]  ;;  %v641_v46 = vld [vmem:[%s3488_s17 + $0x8c8] sm:$0xff] }
 0x131   : > { %2538 = vmatprep.subr.bf16.mxu1 %v2537_v35  ;;  %v2617_v35 = vpack.c.bf16 %v691_v22, %v689_v20  ;;  %v643_v18 = vld [vmem:[%s3488_s17 + $0x8d8] sm:$0xff]  ;;  %v705_v20 = vld [vmem:[%s3488_s17 + $0xac8] sm:$0xff] }
 0x132   : > { %v707_v22 = vld [vmem:[%s3488_s17 + $0xad8] sm:$0xff] }
 0x133   : > { %2476 = vmatpush1.bf16.msra.mxu0 %v2475_v40  ;;  %v2555_v40 = vpack.c.bf16 %v626_v33, %v624_v31  ;;  %v640_v31 = vld [vmem:[%s3488_s17 + $0x8c0] sm:$0xff]  ;;  %v642_v33 = vld [vmem:[%s3488_s17 + $0x8d0] sm:$0xff]  ;;  %v655_v2 = vld [vmem:[%s3488_s17 + $0x938] sm:$0xff] }
 0x134   : > { %2540 = vmatpush1.bf16.msra.mxu1 %v2539_v41  ;;  %2478 = vmatprep.subr.bf16.mxu0 %v2477_v25  ;;  %v2619_v41 = vpack.c.bf16 %v690_v36, %v688_v34  ;;  %v2557_v25 = vpack.c.bf16 %v631_v21, %v629_v37  ;;  %v704_v34 = vld [vmem:[%s3488_s17 + $0xac0] sm:$0xff]  ;;  %v706_v36 = vld [vmem:[%s3488_s17 + $0xad0] sm:$0xff]  ;;  %v645_v37 = vld [vmem:[%s3488_s17 + $0x8e8] sm:$0xff] }
 0x135   : > { %2542 = vmatprep.subr.bf16.mxu1 %v2541_v47  ;;  %v2621_v47 = vpack.c.bf16 %v695_v39, %v693_v38  ;;  %v647_v21 = vld [vmem:[%s3488_s17 + $0x8f8] sm:$0xff]  ;;  %v709_v38 = vld [vmem:[%s3488_s17 + $0xae8] sm:$0xff] }
 0x136   : > { %v711_v39 = vld [vmem:[%s3488_s17 + $0xaf8] sm:$0xff] }
 0x137   : > { %2480 = vmatpush1.bf16.msra.mxu0 %v2479_v56  ;;  %v2559_v56 = vpack.c.bf16 %v630_v43, %v628_v42  ;;  %v644_v42 = vld [vmem:[%s3488_s17 + $0x8e0] sm:$0xff]  ;;  %v646_v43 = vld [vmem:[%s3488_s17 + $0x8f0] sm:$0xff] }
 0x138   : > { %2544 = vmatpush1.bf16.msra.mxu1 %v2543_v57  ;;  %2546 = vmatprep.subr.bf16.mxu0 %v2545_v58  ;;  %v2623_v57 = vpack.c.bf16 %v694_v49, %v692_v44  ;;  %v2561_v58 = vpack.c.bf16 %v635_v53, %v633_v52  ;;  %v708_v44 = vld [vmem:[%s3488_s17 + $0xae0] sm:$0xff]  ;;  %v710_v49 = vld [vmem:[%s3488_s17 + $0xaf0] sm:$0xff]  ;;  %v649_v52 = vld [vmem:[%s3488_s17 + $0x908] sm:$0xff] }
 0x139   : > { %2610 = vmatprep.subr.bf16.mxu1 %v2609_v63  ;;  %v2625_v63 = vpack.c.bf16 %v699_v55, %v697_v54  ;;  %v651_v53 = vld [vmem:[%s3488_s17 + $0x918] sm:$0xff]  ;;  %v713_v54 = vld [vmem:[%s3488_s17 + $0xb08] sm:$0xff] }
 0x13a   : > { %1120 = vmatmul.mubr.f32.vlgmr.msra.gmra.mrb[2].mxu0 %v3835_v3  ;;  %v715_v55 = vld [vmem:[%s3488_s17 + $0xb18] sm:$0xff] }
 0x13b   : > { %1202 = vmatmul.mubr.f32.vlgmr.msra.gmra.mrb[2].mxu1 %v3841_v6  ;;  %2548 = vmatpush1.bf16.msra.mxu0 %v2547_v7  ;;  %v2563_v7 = vpack.c.bf16 %v634_v60, %v632_v59  ;;  %v648_v59 = vld [vmem:[%s3488_s17 + $0x900] sm:$0xff]  ;;  %v650_v60 = vld [vmem:[%s3488_s17 + $0x910] sm:$0xff] }
 0x13c   : > { %2612 = vmatpush1.bf16.msra.mxu1 %v2611_v11  ;;  %2550 = vmatprep.subr.bf16.mxu0 %v2549_v45  ;;  %v636_v11 = vld [vmem:[%s3488_s17 + $0x8a0] sm:$0xff]  ;;  %v638_v45 = vld [vmem:[%s3488_s17 + $0x8b0] sm:$0xff] }
 0x13d   : > { %2614 = vmatprep.subr.bf16.mxu1 %v2613_v16  ;;  %1283 = vmatprep.mubr.f32.mxu0 %v3857_v19  ;;  %v2629_v16 = vpack.c.bf16 %v703_v5, %v701_v4  ;;  %v717_v4 = vld [vmem:[%s3488_s17 + $0xb28] sm:$0xff]  ;;  %v719_v5 = vld [vmem:[%s3488_s17 + $0xb38] sm:$0xff] }
 0x13e   : > { %1365 = vmatprep.mubr.f32.mxu1 %v3864_v23 }
 0x13f   : > { %2552 = vmatpush1.bf16.msra.mxu0 %v2551_v26  ;;  %v2567_v26 = vpack.c.bf16 %v638_v45, %v636_v11  ;;  %v716_v11 = vld [vmem:[%s3488_s17 + $0xb20] sm:$0xff]  ;;  %v2643_v45 = vpack.c.bf16 %v714_v0, %v712_v62 }
 0x140   : > { %2616 = vmatpush1.bf16.msra.mxu1 %v2615_v28  ;;  %2554 = vmatprep.subr.bf16.mxu0 %v2553_v30  ;;  %v2631_v28 = vpack.c.bf16 %v702_v17, %v700_v13  ;;  %v2569_v30 = vpack.c.bf16 %v643_v18, %v641_v46  ;;  %v2581_v13 = vpack.c.bf16 %v655_v2, %v653_v1  ;;  %v657_v17 = vld [vmem:[%s3488_s17 + $0x948] sm:$0xff]  ;;  %v659_v46 = vld [vmem:[%s3488_s17 + $0x958] sm:$0xff] }
 0x141   : > { %2618 = vmatprep.subr.bf16.mxu1 %v2617_v35  ;;  %v2633_v35 = vpack.c.bf16 %v707_v22, %v705_v20  ;;  %v2645_v18 = vpack.c.bf16 %v719_v5, %v717_v4  ;;  %v1727_v20 = vsel %vm1716_vm2, %v3835_v3, 0.0  ;;  %v1728_v22 = vsel %vm1716_vm2, %v3747_v50, 0.0  ;;  %v664_v4 = vld [vmem:[%s3488_s17 + $0x980] sm:$0xff]  ;;  %v878_v5 = vld [vmem:[%s3495_s12 + $0xc] sm:$0x3] }
 0x142   : > { %v2585_v3 = vpack.c.bf16 %v659_v46, %v657_v17  ;;  %v1732_v50 = vsel %vm1716_vm2, %v3841_v6, 0.0  ;;  %v1723_v6 = vsel %vm1716_vm2, %v3634_v27, 0.0  ;;  %v730_v17 = vld [vmem:[%s3488_s17 + $0xb90] sm:$0xff]  ;;  %v669_v46 = vld [vmem:[%s3488_s17 + $0x9a8] sm:$0xff] }
 0x143   : > { %2556 = vmatpush1.bf16.msra.mxu0 %v2555_v40  ;;  %v2571_v40 = vpack.c.bf16 %v642_v33, %v640_v31  ;;  %v1729_v31 = vadd.f32 %v1728_v22, %v1727_v20  ;;  %v1717_v33 = vsel %vm1716_vm2, %v3681_v29, 0.0  ;;  %v720_v29 = vld [vmem:[%s3488_s17 + $0xb40] sm:$0xff] }
 0x144   : > { %2620 = vmatpush1.bf16.msra.mxu1 %v2619_v41  ;;  %2558 = vmatprep.subr.bf16.mxu0 %v2557_v25  ;;  %v2635_v41 = vpack.c.bf16 %v706_v36, %v704_v34  ;;  %v2573_v25 = vpack.c.bf16 %v647_v21, %v645_v37  ;;  %v1718_v34 = vsel %vm1716_vm2, %v3627_v24, 0.0  ;;  %v656_v37 = vld [vmem:[%s3488_s17 + $0x940] sm:$0xff]  ;;  %v658_v21 = vld [vmem:[%s3488_s17 + $0x950] sm:$0xff]  ;;  %v3948_v24 = vrot.slane %v3850_v15, %v3669_v12 }
 0x145   : > { %2622 = vmatprep.subr.bf16.mxu1 %v2621_v47  ;;  %v2637_v47 = vpack.c.bf16 %v711_v39, %v709_v38  ;;  %v1719_v36 = vadd.f32 %v1718_v34, %v1717_v33  ;;  %v1733_v38 = vsel %vm1716_vm2, %v3751_v51, 0.0  ;;  %v1722_v39 = vsel %vm1716_vm2, %v3687_v32, 0.0  ;;  %1730 = vadd.xlane.f32.xlu1 %v1729_v31  ;;  %v725_v51 = vld [vmem:[%s3488_s17 + $0xb68] sm:$0xff] }
 0x146   : > { %v1734_v15 = vadd.f32 %v1733_v38, %v1732_v50  ;;  %v1724_v32 = vadd.f32 %v1723_v6, %v1722_v39  ;;  %v1742_v27 = vsel %vm1716_vm2, %v3948_v24, 0.0  ;;  %v668_v50 = vld [vmem:[%s3488_s17 + $0x9a0] sm:$0xff]  ;;  %v734_v39 = vld [vmem:[%s3488_s17 + $0xbb0] sm:$0xff]  ;;  %v673_v6 = vld [vmem:[%s3488_s17 + $0x9c8] sm:$0xff] }
 0x147   : > { %2560 = vmatpush1.bf16.msra.mxu0 %v2559_v56  ;;  %v2575_v56 = vpack.c.bf16 %v646_v43, %v644_v42  ;;  %v663_v42 = vld [vmem:[%s3488_s17 + $0x978] sm:$0xff]  ;;  %v3961_v43 = vrot.slane %v3847_v14, %v3669_v12  ;;  %1720 = vadd.xlane.f32.xlu0 %v1719_v36  ;;  %v2587_v14 = vpack.c.bf16 %v658_v21, %v656_v37  ;;  %v670_v37 = vld [vmem:[%s3488_s17 + $0x9b0] sm:$0xff]  ;;  %v732_v21 = vld [vmem:[%s3488_s17 + $0xba0] sm:$0xff] }
 0x148   : > { %2624 = vmatpush1.bf16.msra.mxu1 %v2623_v57  ;;  %2562 = vmatprep.subr.bf16.mxu0 %v2561_v58  ;;  %v2639_v57 = vpack.c.bf16 %v710_v49, %v708_v44  ;;  %v2577_v58 = vpack.c.bf16 %v651_v53, %v649_v52  ;;  %v727_v44 = vld [vmem:[%s3488_s17 + $0xb78] sm:$0xff]  ;;  %v660_v49 = vld [vmem:[%s3488_s17 + $0x960] sm:$0xff]  ;;  %v1738_v53 = vsel %vm1716_vm2, %v3857_v19, 0.0 }
 0x149   : > { %2626 = vmatprep.subr.bf16.mxu1 %v2625_v63  ;;  %v2641_v63 = vpack.c.bf16 %v715_v55, %v713_v54  ;;  %v1737_v52 = vsel %vm1716_vm2, %v3961_v43, 0.0  ;;  %1735 = vadd.xlane.f32.xlu1 %v1734_v15  ;;  %v731_v19 = vld [vmem:[%s3488_s17 + $0xb98] sm:$0xff]  ;;  %v2663_v15 = vpack.c.bf16 %v734_v39, %v732_v21 }
 0x14a   : > { %v1739_v0 = vadd.f32 %v1738_v53, %v1737_v52  ;;  %v679_v52 = vld [vmem:[%s3488_s17 + $0x9f8] sm:$0xff]  ;;  %v741_v53 = vld [vmem:[%s3488_s17 + $0xbe8] sm:$0xff] }
 0x14b   : > { %2564 = vmatpush1.bf16.msra.mxu0 %v2563_v7  ;;  %v2579_v7 = vpack.c.bf16 %v650_v60, %v648_v59  ;;  %v665_v59 = vld [vmem:[%s3488_s17 + $0x988] sm:$0xff]  ;;  %v667_v60 = vld [vmem:[%s3488_s17 + $0x998] sm:$0xff]  ;;  %1725 = vadd.xlane.f32.xlu0 %v1724_v32  ;;  %v674_v32 = vld [vmem:[%s3488_s17 + $0x9d0] sm:$0xff] }
 0x14c   : > { %2628 = vmatpush1.bf16.msra.mxu1 %v2627_v8  ;;  %2566 = vmatprep.subr.bf16.mxu0 %v2565_v9  ;;  %v652_v8 = vld [vmem:[%s3488_s17 + $0x920] sm:$0xff]  ;;  %v654_v9 = vld [vmem:[%s3488_s17 + $0x930] sm:$0xff]  ;;  %v819_v21 = vld [vmem:[%s3488_s17 + $0xe58] sm:$0xff] }
 0x14d   : > { %2630 = vmatprep.subr.bf16.mxu1 %v2629_v16  ;;  %v718_v16 = vld [vmem:[%s3488_s17 + $0xb30] sm:$0xff] }
 0x14f   : > { %2568 = vmatpush1.bf16.msra.mxu0 %v2567_v26  ;;  %v2583_v26 = vpack.c.bf16 %v654_v9, %v652_v8  ;;  %v666_v8 = vld [vmem:[%s3488_s17 + $0x990] sm:$0xff]  ;;  %v728_v9 = vld [vmem:[%s3488_s17 + $0xb80] sm:$0xff]  ;;  %1740 = vadd.xlane.f32.xlu0 %v1739_v0  ;;  %v809_v0 = vld [vmem:[%s3488_s17 + $0xe08] sm:$0xff] }
 0x150   : > { %2632 = vmatpush1.bf16.msra.mxu1 %v2631_v28  ;;  %2570 = vmatprep.subr.bf16.mxu0 %v2569_v30  ;;  %v721_v28 = vld [vmem:[%s3488_s17 + $0xb48] sm:$0xff]  ;;  %v723_v30 = vld [vmem:[%s3488_s17 + $0xb58] sm:$0xff]  ;;  %v2595_v33 = vpack.c.bf16 %v666_v8, %v664_v4  ;;  %v746_v8 = vld [vmem:[%s3488_s17 + $0xc10] sm:$0xff] }
 0x151   : > { %2634 = vmatprep.subr.bf16.mxu1 %v2633_v35  ;;  %v2647_v35 = vpack.c.bf16 %v718_v16, %v716_v11  ;;  %v3986_v11 = vrot.slane %v878_v5, %v3669_v12 }
 0x153   : > { %2572 = vmatpush1.bf16.msra.mxu0 %v2571_v40  ;;  %v2649_v40 = vpack.c.bf16 %v723_v30, %v721_v28  ;;  %v735_v28 = vld [vmem:[%s3488_s17 + $0xbb8] sm:$0xff]  ;;  %v1747_v30 = vsel %vm1716_vm2, %v3986_v11, 0.0 }
 0x154   : > { %2636 = vmatpush1.bf16.msra.mxu1 %v2635_v41  ;;  %2574 = vmatprep.subr.bf16.mxu0 %v2573_v25  ;;  %v722_v41 = vld [vmem:[%s3488_s17 + $0xb50] sm:$0xff]  ;;  %v661_v25 = vld [vmem:[%s3488_s17 + $0x968] sm:$0xff] }
 0x155   : > { %2638 = vmatprep.subr.bf16.mxu1 %v2637_v47  ;;  %v1743_v47 = vsel %vm1716_vm2, %v3864_v23, 0.0  ;;  %v2651_v54 = vpack.c.bf16 %v722_v41, %v720_v29  ;;  %v2589_v55 = vpack.c.bf16 %v663_v42, %v661_v25  ;;  %v726_v23 = vld [vmem:[%s3488_s17 + $0xb70] sm:$0xff]  ;;  %v737_v41 = vld [vmem:[%s3488_s17 + $0xbc8] sm:$0xff]  ;;  %v739_v25 = vld [vmem:[%s3488_s17 + $0xbd8] sm:$0xff]  ;;  %v2599_v42 = vpack.c.bf16 %v670_v37, %v668_v50 }
 0x156   : > { %v1744_v62 = vadd.f32 %v1743_v47, %v1742_v27  ;;  %v736_v27 = vld [vmem:[%s3488_s17 + $0xbc0] sm:$0xff]  ;;  %v2665_v47 = vpack.c.bf16 %v739_v25, %v737_v41  ;;  %v755_v50 = vld [vmem:[%s3488_s17 + $0xc58] sm:$0xff]  ;;  %v817_v37 = vld [vmem:[%s3488_s17 + $0xe48] sm:$0xff] }
 0x157   : > { %2576 = vmatpush1.bf16.msra.mxu0 %v2575_v56  ;;  %v662_v56 = vld [vmem:[%s3488_s17 + $0x970] sm:$0xff]  ;;  %v816_v41 = vld [vmem:[%s3488_s17 + $0xe40] sm:$0xff] }
 0x158   : > { %2640 = vmatpush1.bf16.msra.mxu1 %v2639_v57  ;;  %2578 = vmatprep.subr.bf16.mxu0 %v2577_v58  ;;  %v724_v57 = vld [vmem:[%s3488_s17 + $0xb60] sm:$0xff]  ;;  %v2653_v58 = vpack.c.bf16 %v727_v44, %v725_v51  ;;  %v2591_v1 = vpack.c.bf16 %v662_v56, %v660_v49  ;;  %v677_v49 = vld [vmem:[%s3488_s17 + $0x9e8] sm:$0xff]  ;;  %v818_v25 = vld [vmem:[%s3488_s17 + $0xe50] sm:$0xff] }
 0x159   : > { %2642 = vmatprep.subr.bf16.mxu1 %v2641_v63  ;;  %v729_v63 = vld [vmem:[%s3488_s17 + $0xb88] sm:$0xff]  ;;  %v2655_v2 = vpack.c.bf16 %v726_v23, %v724_v57  ;;  %1745 = vadd.xlane.f32.xlu1 %v1744_v62  ;;  %v672_v44 = vld [vmem:[%s3488_s17 + $0x9c0] sm:$0xff]  ;;  %v2605_v57 = vpack.c.bf16 %v679_v52, %v677_v49  ;;  %v742_v62 = vld [vmem:[%s3488_s17 + $0xbf0] sm:$0xff] }
 0x15a   : > { %v2657_v16 = vpack.c.bf16 %v731_v19, %v729_v63  ;;  %v676_v23 = vld [vmem:[%s3488_s17 + $0x9e0] sm:$0xff]  ;;  %v745_v63 = vld [vmem:[%s3488_s17 + $0xc08] sm:$0xff]  ;;  %v747_v19 = vld [vmem:[%s3488_s17 + $0xc18] sm:$0xff] }
 0x15b   : > { %2580 = vmatpush1.bf16.msra.mxu0 %v2579_v7  ;;  %v2593_v7 = vpack.c.bf16 %v667_v60, %v665_v59  ;;  %v740_v59 = vld [vmem:[%s3488_s17 + $0xbe0] sm:$0xff]  ;;  %v822_v52 = vld [vmem:[%s3488_s17 + $0xe70] sm:$0xff] }
 0x15c   : > { %2644 = vmatpush1.bf16.msra.mxu1 %v2643_v45  ;;  %2582 = vmatprep.subr.bf16.mxu0 %v2581_v13  ;;  %v3989_v45 = vrot.slane %v878_v5, %v3612_v10  ;;  %v879_v13 = vld [vmem:[%s3495_s12 + $0xe] sm:$0x3]  ;;  %v2671_v4 = vpack.c.bf16 %v742_v62, %v740_v59  ;;  %v2673_v5 = vpack.c.bf16 %v747_v19, %v745_v63  ;;  %v820_v49 = vld [vmem:[%s3488_s17 + $0xe60] sm:$0xff]  ;;  %v762_v59 = vld [vmem:[%s3488_s17 + $0xc90] sm:$0xff] }
 0x15d   : > { %2646 = vmatprep.subr.bf16.mxu1 %v2645_v18  ;;  %v671_v18 = vld [vmem:[%s3488_s17 + $0x9b8] sm:$0xff]  ;;  %v3996_v20 = vrot.slane %v879_v13, %v3669_v12  ;;  %v3999_v22 = vrot.slane %v879_v13, %v3612_v10  ;;  %v826_v63 = vld [vmem:[%s3488_s17 + $0xe90] sm:$0xff]  ;;  %v765_v19 = vld [vmem:[%s3488_s17 + $0xca8] sm:$0xff] }
 0x15e   : > { %v1748_v31 = vsel %vm1716_vm2, %v3989_v45, 0.0  ;;  %v2597_v36 = vpack.c.bf16 %v671_v18, %v669_v46  ;;  %v751_v46 = vld [vmem:[%s3488_s17 + $0xc38] sm:$0xff]  ;;  %v813_v18 = vld [vmem:[%s3488_s17 + $0xe28] sm:$0xff] }
 0x15f   : > { %2584 = vmatpush1.bf16.msra.mxu0 %v2583_v26  ;;  %v733_v26 = vld [vmem:[%s3488_s17 + $0xba8] sm:$0xff]  ;;  %v1752_v10 = vsel %vm1716_vm2, %v3996_v20, 0.0  ;;  %v1753_v34 = vsel %vm1716_vm2, %v3999_v22, 0.0 }
 0x160   : > { %2648 = vmatpush1.bf16.msra.mxu1 %v2647_v35  ;;  %2586 = vmatprep.subr.bf16.mxu0 %v2585_v3  ;;  %v1749_v35 = vadd.f32 %v1748_v31, %v1747_v30  ;;  %v2659_v3 = vpack.c.bf16 %v730_v17, %v728_v9  ;;  %v1754_v29 = vadd.f32 %v1753_v34, %v1752_v10  ;;  %v808_v9 = vld [vmem:[%s3488_s17 + $0xe00] sm:$0xff]  ;;  %v749_v17 = vld [vmem:[%s3488_s17 + $0xc28] sm:$0xff]  ;;  %v750_v10 = vld [vmem:[%s3488_s17 + $0xc30] sm:$0xff] }
 0x161   : > { %2650 = vmatprep.subr.bf16.mxu1 %v2649_v40  ;;  %v2661_v38 = vpack.c.bf16 %v735_v28, %v733_v26  ;;  %v675_v40 = vld [vmem:[%s3488_s17 + $0x9d8] sm:$0xff]  ;;  %v2677_v31 = vpack.c.bf16 %v751_v46, %v749_v17  ;;  %v812_v34 = vld [vmem:[%s3488_s17 + $0xe20] sm:$0xff]  ;;  %v830_v17 = vld [vmem:[%s3488_s17 + $0xeb0] sm:$0xff] }
 0x162   : > { %1755 = vadd.xlane.f32.xlu1 %v1754_v29  ;;  %1750 = vadd.xlane.f32.xlu0 %v1749_v35  ;;  %v2601_v51 = vpack.c.bf16 %v675_v40, %v673_v6  ;;  %v815_v26 = vld [vmem:[%s3488_s17 + $0xe38] sm:$0xff]  ;;  %v752_v6 = vld [vmem:[%s3488_s17 + $0xc40] sm:$0xff]  ;;  %v754_v40 = vld [vmem:[%s3488_s17 + $0xc50] sm:$0xff] }
 0x163   : > { %2588 = vmatpush1.bf16.msra.mxu0 %v2587_v14  ;;  %v738_v14 = vld [vmem:[%s3488_s17 + $0xbd0] sm:$0xff]  ;;  %v2741_v35 = vpack.c.bf16 %v815_v26, %v813_v18  ;;  %v769_v46 = vld [vmem:[%s3488_s17 + $0xcc8] sm:$0xff]  ;;  %v771_v18 = vld [vmem:[%s3488_s17 + $0xcd8] sm:$0xff] }
 0x164   : > { %2652 = vmatpush1.bf16.msra.mxu1 %v2651_v54  ;;  %2590 = vmatprep.subr.bf16.mxu0 %v2589_v55  ;;  %v743_v54 = vld [vmem:[%s3488_s17 + $0xbf8] sm:$0xff]  ;;  %v2603_v55 = vpack.c.bf16 %v674_v32, %v672_v44  ;;  %v2667_v56 = vpack.c.bf16 %v738_v14, %v736_v27  ;;  %v2683_v44 = vpack.c.bf16 %v754_v40, %v752_v6  ;;  %v758_v14 = vld [vmem:[%s3488_s17 + $0xc70] sm:$0xff]  ;;  %v833_v26 = vld [vmem:[%s3488_s17 + $0xec8] sm:$0xff] }
 0x165   : > { %2654 = vmatprep.subr.bf16.mxu1 %v2653_v58  ;;  %v678_v58 = vld [vmem:[%s3488_s17 + $0x9f0] sm:$0xff]  ;;  %v2669_v60 = vpack.c.bf16 %v743_v54, %v741_v53  ;;  %v2747_v32 = vpack.c.bf16 %v818_v25, %v816_v41  ;;  %v761_v53 = vld [vmem:[%s3488_s17 + $0xc88] sm:$0xff]  ;;  %v772_v40 = vld [vmem:[%s3488_s17 + $0xce0] sm:$0xff] }
 0x166   : > { %v825_v54 = vld [vmem:[%s3488_s17 + $0xe88] sm:$0xff]  ;;  %v774_v41 = vld [vmem:[%s3488_s17 + $0xcf0] sm:$0xff] }
 0x167   : > { %2592 = vmatpush1.bf16.msra.mxu0 %v2591_v1  ;;  %v811_v1 = vld [vmem:[%s3488_s17 + $0xe18] sm:$0xff] }
 0x168   : > { %2656 = vmatpush1.bf16.msra.mxu1 %v2655_v2  ;;  %2594 = vmatprep.subr.bf16.mxu0 %v2593_v7  ;;  %v2607_v2 = vpack.c.bf16 %v678_v58, %v676_v23  ;;  %v744_v7 = vld [vmem:[%s3488_s17 + $0xc00] sm:$0xff]  ;;  %v2737_v13 = vpack.c.bf16 %v811_v1, %v809_v0  ;;  %v767_v0 = vld [vmem:[%s3488_s17 + $0xcb8] sm:$0xff]  ;;  %v829_v1 = vld [vmem:[%s3488_s17 + $0xea8] sm:$0xff] }
 0x169   : > { %2658 = vmatprep.subr.bf16.mxu1 %v2657_v16  ;;  %v810_v16 = vld [vmem:[%s3488_s17 + $0xe10] sm:$0xff]  ;;  %v2675_v28 = vpack.c.bf16 %v746_v8, %v744_v7  ;;  %v760_v58 = vld [vmem:[%s3488_s17 + $0xc80] sm:$0xff]  ;;  %v2693_v7 = vpack.c.bf16 %v767_v0, %v765_v19  ;;  %v785_v0 = vld [vmem:[%s3488_s17 + $0xd48] sm:$0xff] }
 0x16a   : > { %v2739_v30 = vpack.c.bf16 %v810_v16, %v808_v9  ;;  %v764_v8 = vld [vmem:[%s3488_s17 + $0xca0] sm:$0xff]  ;;  %v766_v9 = vld [vmem:[%s3488_s17 + $0xcb0] sm:$0xff] }
 0x16b   : > { %2596 = vmatpush1.bf16.msra.mxu0 %v2595_v33  ;;  %v748_v33 = vld [vmem:[%s3488_s17 + $0xc20] sm:$0xff]  ;;  %v846_v19 = vld [vmem:[%s3488_s17 + $0xf30] sm:$0xff] }
 0x16c   : > { %2660 = vmatpush1.bf16.msra.mxu1 %v2659_v3  ;;  %2598 = vmatprep.subr.bf16.mxu0 %v2597_v36  ;;  %v814_v3 = vld [vmem:[%s3488_s17 + $0xe30] sm:$0xff]  ;;  %v753_v36 = vld [vmem:[%s3488_s17 + $0xc48] sm:$0xff]  ;;  %v2679_v29 = vpack.c.bf16 %v750_v10, %v748_v33  ;;  %v2697_v33 = vpack.c.bf16 %v771_v18, %v769_v46  ;;  %v768_v10 = vld [vmem:[%s3488_s17 + $0xcc0] sm:$0xff] }
 0x16d   : > { %2662 = vmatprep.subr.bf16.mxu1 %v2661_v38  ;;  %v2743_v38 = vpack.c.bf16 %v814_v3, %v812_v34  ;;  %v2681_v39 = vpack.c.bf16 %v755_v50, %v753_v36  ;;  %v770_v34 = vld [vmem:[%s3488_s17 + $0xcd0] sm:$0xff]  ;;  %v773_v50 = vld [vmem:[%s3488_s17 + $0xce8] sm:$0xff] }
 0x16e   : > { %v834_v36 = vld [vmem:[%s3488_s17 + $0xed0] sm:$0xff]  ;;  %v789_v18 = vld [vmem:[%s3488_s17 + $0xd68] sm:$0xff] }
 0x16f   : > { %2600 = vmatpush1.bf16.msra.mxu0 %v2599_v42  ;;  %v757_v42 = vld [vmem:[%s3488_s17 + $0xc68] sm:$0xff]  ;;  %v850_v46 = vld [vmem:[%s3488_s17 + $0xf50] sm:$0xff] }
 0x170   : > { %2664 = vmatpush1.bf16.msra.mxu1 %v2663_v15  ;;  %2602 = vmatprep.subr.bf16.mxu0 %v2601_v51  ;;  %v759_v15 = vld [vmem:[%s3488_s17 + $0xc78] sm:$0xff] }
 0x171   : > { %2666 = vmatprep.subr.bf16.mxu1 %v2665_v47  ;;  %v823_v51 = vld [vmem:[%s3488_s17 + $0xe78] sm:$0xff]  ;;  %v2685_v27 = vpack.c.bf16 %v759_v15, %v757_v42  ;;  %v756_v47 = vld [vmem:[%s3488_s17 + $0xc60] sm:$0xff]  ;;  %v838_v42 = vld [vmem:[%s3488_s17 + $0xef0] sm:$0xff] }
 0x172   : > { %v777_v15 = vld [vmem:[%s3488_s17 + $0xd08] sm:$0xff] }
 0x173   : > { %2604 = vmatpush1.bf16.msra.mxu0 %v2603_v55  ;;  %v827_v55 = vld [vmem:[%s3488_s17 + $0xe98] sm:$0xff] }
 0x174   : > { %2668 = vmatpush1.bf16.msra.mxu1 %v2667_v56  ;;  %2606 = vmatprep.subr.bf16.mxu0 %v2605_v57  ;;  %v2687_v56 = vpack.c.bf16 %v758_v14, %v756_v47  ;;  %v2751_v57 = vpack.c.bf16 %v822_v52, %v820_v49  ;;  %v2753_v62 = vpack.c.bf16 %v827_v55, %v825_v54  ;;  %v776_v14 = vld [vmem:[%s3488_s17 + $0xd00] sm:$0xff]  ;;  %v778_v49 = vld [vmem:[%s3488_s17 + $0xd10] sm:$0xff]  ;;  %v783_v54 = vld [vmem:[%s3488_s17 + $0xd38] sm:$0xff] }
 0x175   : > { %2670 = vmatprep.subr.bf16.mxu1 %v2669_v60  ;;  %v824_v60 = vld [vmem:[%s3488_s17 + $0xe80] sm:$0xff]  ;;  %v845_v55 = vld [vmem:[%s3488_s17 + $0xf28] sm:$0xff] }
 0x177   : > { %2608 = vmatpush1.bf16.msra.mxu0 %v2607_v2  ;;  %v831_v2 = vld [vmem:[%s3488_s17 + $0xeb8] sm:$0xff] }
 0x178   : > { %2672 = vmatpush1.bf16.msra.mxu1 %v2671_v4  ;;  %2674 = vmatprep.subr.bf16.mxu0 %v2673_v5  ;;  %v2691_v4 = vpack.c.bf16 %v762_v59, %v760_v58  ;;  %v2755_v5 = vpack.c.bf16 %v826_v63, %v824_v60  ;;  %v2757_v16 = vpack.c.bf16 %v831_v2, %v829_v1  ;;  %v780_v59 = vld [vmem:[%s3488_s17 + $0xd20] sm:$0xff]  ;;  %v782_v60 = vld [vmem:[%s3488_s17 + $0xd30] sm:$0xff]  ;;  %v787_v1 = vld [vmem:[%s3488_s17 + $0xd58] sm:$0xff] }
 0x179   : > { %2738 = vmatprep.subr.bf16.mxu1 %v2737_v13  ;;  %v828_v13 = vld [vmem:[%s3488_s17 + $0xea0] sm:$0xff]  ;;  %v849_v2 = vld [vmem:[%s3488_s17 + $0xf48] sm:$0xff] }
 0x17a   : > { %1284 = vmatmul.mubr.f32.vlgmr.msra.gmra.mrb[4].mxu0 %v3961_v43  ;;  %v2745_v43 = vpack.c.bf16 %v819_v21, %v817_v37  ;;  %v775_v37 = vld [vmem:[%s3488_s17 + $0xcf8] sm:$0xff]  ;;  %v837_v21 = vld [vmem:[%s3488_s17 + $0xee8] sm:$0xff] }
 0x17b   : > { %1366 = vmatmul.mubr.f32.vlgmr.msra.gmra.mrb[4].mxu1 %v3948_v24  ;;  %2676 = vmatpush1.bf16.msra.mxu0 %v2675_v28  ;;  %v821_v24 = vld [vmem:[%s3488_s17 + $0xe68] sm:$0xff]  ;;  %v835_v28 = vld [vmem:[%s3488_s17 + $0xed8] sm:$0xff]  ;;  %v2701_v6 = vpack.c.bf16 %v775_v37, %v773_v50  ;;  %v854_v50 = vld [vmem:[%s3488_s17 + $0xf70] sm:$0xff] }
 0x17c   : > { %2740 = vmatpush1.bf16.msra.mxu1 %v2739_v30  ;;  %2678 = vmatprep.subr.bf16.mxu0 %v2677_v31  ;;  %v2695_v30 = vpack.c.bf16 %v766_v9, %v764_v8  ;;  %v2759_v31 = vpack.c.bf16 %v830_v17, %v828_v13  ;;  %v2761_v3 = vpack.c.bf16 %v835_v28, %v833_v26  ;;  %v784_v9 = vld [vmem:[%s3488_s17 + $0xd40] sm:$0xff]  ;;  %v786_v13 = vld [vmem:[%s3488_s17 + $0xd50] sm:$0xff]  ;;  %v791_v26 = vld [vmem:[%s3488_s17 + $0xd78] sm:$0xff] }
 0x17d   : > { %2742 = vmatprep.subr.bf16.mxu1 %v2741_v35  ;;  %1447 = vmatprep.mubr.f32.mxu0 %v3989_v45  ;;  %v2749_v45 = vpack.c.bf16 %v823_v51, %v821_v24  ;;  %v832_v35 = vld [vmem:[%s3488_s17 + $0xec0] sm:$0xff]  ;;  %v779_v24 = vld [vmem:[%s3488_s17 + $0xd18] sm:$0xff]  ;;  %v841_v51 = vld [vmem:[%s3488_s17 + $0xf08] sm:$0xff]  ;;  %v2713_v8 = vpack.c.bf16 %v787_v1, %v785_v0 }
 0x17e   : > { %1529 = vmatprep.mubr.f32.mxu1 %v3999_v22  ;;  %v763_v22 = vld [vmem:[%s3488_s17 + $0xc98] sm:$0xff]  ;;  %v2705_v47 = vpack.c.bf16 %v779_v24, %v777_v15  ;;  %v853_v28 = vld [vmem:[%s3488_s17 + $0xf68] sm:$0xff]  ;;  %v858_v15 = vld [vmem:[%s3488_s17 + $0xf90] sm:$0xff] }
 0x17f   : > { %2680 = vmatpush1.bf16.msra.mxu0 %v2679_v29  ;;  %v2689_v23 = vpack.c.bf16 %v763_v22, %v761_v53  ;;  %v839_v29 = vld [vmem:[%s3488_s17 + $0xef8] sm:$0xff]  ;;  %v842_v53 = vld [vmem:[%s3488_s17 + $0xf10] sm:$0xff]  ;;  %v781_v22 = vld [vmem:[%s3488_s17 + $0xd28] sm:$0xff] }
 0x180   : > { %2744 = vmatpush1.bf16.msra.mxu1 %v2743_v38  ;;  %2682 = vmatprep.subr.bf16.mxu0 %v2681_v39  ;;  %v2699_v38 = vpack.c.bf16 %v770_v34, %v768_v10  ;;  %v2763_v39 = vpack.c.bf16 %v834_v36, %v832_v35  ;;  %v2765_v25 = vpack.c.bf16 %v839_v29, %v837_v21  ;;  %v788_v34 = vld [vmem:[%s3488_s17 + $0xd60] sm:$0xff]  ;;  %v790_v35 = vld [vmem:[%s3488_s17 + $0xd70] sm:$0xff]  ;;  %v793_v37 = vld [vmem:[%s3488_s17 + $0xd88] sm:$0xff] }
 0x181   : > { %2746 = vmatprep.subr.bf16.mxu1 %v2745_v43  ;;  %v836_v43 = vld [vmem:[%s3488_s17 + $0xee0] sm:$0xff]  ;;  %v2709_v58 = vpack.c.bf16 %v783_v54, %v781_v22  ;;  %v2717_v10 = vpack.c.bf16 %v791_v26, %v789_v18  ;;  %v795_v21 = vld [vmem:[%s3488_s17 + $0xd98] sm:$0xff]  ;;  %v857_v29 = vld [vmem:[%s3488_s17 + $0xf88] sm:$0xff] }
 0x182   : > { %v797_v24 = vld [vmem:[%s3488_s17 + $0xda8] sm:$0xff]  ;;  %v862_v22 = vld [vmem:[%s3488_s17 + $0xfb0] sm:$0xff] }
 0x183   : > { %2684 = vmatpush1.bf16.msra.mxu0 %v2683_v44  ;;  %v843_v44 = vld [vmem:[%s3488_s17 + $0xf18] sm:$0xff]  ;;  %v801_v54 = vld [vmem:[%s3488_s17 + $0xdc8] sm:$0xff]  ;;  %v866_v0 = vld [vmem:[%s3488_s17 + $0xfd0] sm:$0xff] }
 0x184   : > { %2748 = vmatpush1.bf16.msra.mxu1 %v2747_v32  ;;  %2686 = vmatprep.subr.bf16.mxu0 %v2685_v27  ;;  %v2703_v32 = vpack.c.bf16 %v774_v41, %v772_v40  ;;  %v2767_v27 = vpack.c.bf16 %v838_v42, %v836_v43  ;;  %v2769_v52 = vpack.c.bf16 %v843_v44, %v841_v51  ;;  %v792_v41 = vld [vmem:[%s3488_s17 + $0xd80] sm:$0xff]  ;;  %v794_v43 = vld [vmem:[%s3488_s17 + $0xd90] sm:$0xff]  ;;  %v799_v51 = vld [vmem:[%s3488_s17 + $0xdb8] sm:$0xff] }
 0x185   : > { %2750 = vmatprep.subr.bf16.mxu1 %v2749_v45  ;;  %v840_v45 = vld [vmem:[%s3488_s17 + $0xf00] sm:$0xff]  ;;  %v2721_v40 = vpack.c.bf16 %v795_v21, %v793_v37  ;;  %v861_v44 = vld [vmem:[%s3488_s17 + $0xfa8] sm:$0xff]  ;;  %v870_v18 = vld [vmem:[%s3488_s17 + $0xff0] sm:$0xff] }
 0x186   : > { %v805_v1 = vld [vmem:[%s3488_s17 + $0xde8] sm:$0xff] }
 0x187   : > { %2688 = vmatpush1.bf16.msra.mxu0 %v2687_v56  ;;  %v847_v56 = vld [vmem:[%s3488_s17 + $0xf38] sm:$0xff] }
 0x188   : > { %2752 = vmatpush1.bf16.msra.mxu1 %v2751_v57  ;;  %2690 = vmatprep.subr.bf16.mxu0 %v2689_v23  ;;  %v2707_v57 = vpack.c.bf16 %v778_v49, %v776_v14  ;;  %v2771_v23 = vpack.c.bf16 %v842_v53, %v840_v45  ;;  %v2773_v63 = vpack.c.bf16 %v847_v56, %v845_v55  ;;  %v796_v49 = vld [vmem:[%s3488_s17 + $0xda0] sm:$0xff]  ;;  %v798_v45 = vld [vmem:[%s3488_s17 + $0xdb0] sm:$0xff]  ;;  %v803_v55 = vld [vmem:[%s3488_s17 + $0xdd8] sm:$0xff] }
 0x189   : > { %2754 = vmatprep.subr.bf16.mxu1 %v2753_v62  ;;  %v844_v62 = vld [vmem:[%s3488_s17 + $0xf20] sm:$0xff]  ;;  %v2725_v14 = vpack.c.bf16 %v799_v51, %v797_v24  ;;  %v865_v56 = vld [vmem:[%s3488_s17 + $0xfc8] sm:$0xff]  ;;  %v1711_v24 = vld [vmem:[#allocation3 + $0x3] sm:$0x1] }
 0x18a   : > { %v1709_v51 = vld [vmem:[#allocation3 + $0x1] sm:$0x1] }
 0x18b   : > { %2692 = vmatpush1.bf16.msra.mxu0 %v2691_v4  ;;  %v851_v4 = vld [vmem:[%s3488_s17 + $0xf58] sm:$0xff] }
 0x18c   : > { %2756 = vmatpush1.bf16.msra.mxu1 %v2755_v5  ;;  %2694 = vmatprep.subr.bf16.mxu0 %v2693_v7  ;;  %v2711_v5 = vpack.c.bf16 %v782_v60, %v780_v59  ;;  %v2775_v7 = vpack.c.bf16 %v846_v19, %v844_v62  ;;  %v2777_v17 = vpack.c.bf16 %v851_v4, %v849_v2  ;;  %v800_v60 = vld [vmem:[%s3488_s17 + $0xdc0] sm:$0xff]  ;;  %v802_v62 = vld [vmem:[%s3488_s17 + $0xdd0] sm:$0xff]  ;;  %v807_v2 = vld [vmem:[%s3488_s17 + $0xdf8] sm:$0xff] }
 0x18d   : > { %2758 = vmatprep.subr.bf16.mxu1 %v2757_v16  ;;  %v848_v16 = vld [vmem:[%s3488_s17 + $0xf40] sm:$0xff]  ;;  %v2729_v59 = vpack.c.bf16 %v803_v55, %v801_v54  ;;  %v869_v4 = vld [vmem:[%s3488_s17 + $0xfe8] sm:$0xff]  ;;  %v1713_v55 = vld [vmem:[#allocation3 + $0x5] sm:$0x1] }
 0x18f   : > { %2696 = vmatpush1.bf16.msra.mxu0 %v2695_v30  ;;  %v855_v30 = vld [vmem:[%s3488_s17 + $0xf78] sm:$0xff] }
 0x190   : > { %2760 = vmatpush1.bf16.msra.mxu1 %v2759_v31  ;;  %2698 = vmatprep.subr.bf16.mxu0 %v2697_v33  ;;  %v2715_v31 = vpack.c.bf16 %v786_v13, %v784_v9  ;;  %v2779_v33 = vpack.c.bf16 %v850_v46, %v848_v16  ;;  %v2781_v36 = vpack.c.bf16 %v855_v30, %v853_v28  ;;  %v804_v13 = vld [vmem:[%s3488_s17 + $0xde0] sm:$0xff]  ;;  %v806_v16 = vld [vmem:[%s3488_s17 + $0xdf0] sm:$0xff]  ;;  %v3227_v30 = vmov 1966171168  }
 0x191   : > { %2762 = vmatprep.subr.bf16.mxu1 %v2761_v3  ;;  %v852_v3 = vld [vmem:[%s3488_s17 + $0xf60] sm:$0xff]  ;;  %v2733_v9 = vpack.c.bf16 %v807_v2, %v805_v1  ;;  %v2735_v26 = vpack.c.bf16 %v806_v16, %v804_v13  ;;  %v1715_v2 = vld [vmem:[#allocation3 + $0x7] sm:$0x1] }
 0x192   : > { %v868_v46 = vld [vmem:[%s3488_s17 + $0xfe0] sm:$0xff] }
 0x193   : > { %2700 = vmatpush1.bf16.msra.mxu0 %v2699_v38  ;;  %v859_v38 = vld [vmem:[%s3488_s17 + $0xf98] sm:$0xff]  ;;  %v2799_v28 = vpack.c.bf16 %v870_v18, %v868_v46 }
 0x194   : > { %2764 = vmatpush1.bf16.msra.mxu1 %v2763_v39  ;;  %2702 = vmatprep.subr.bf16.mxu0 %v2701_v6  ;;  %v2719_v39 = vpack.c.bf16 %v790_v35, %v788_v34  ;;  %v2783_v6 = vpack.c.bf16 %v854_v50, %v852_v3  ;;  %v2785_v42 = vpack.c.bf16 %v859_v38, %v857_v29  ;;  %v1536_v29 = vld [vmem:[#allocation2] sm:$0x3] }
 0x195   : > { %2766 = vmatprep.subr.bf16.mxu1 %v2765_v25  ;;  %v856_v25 = vld [vmem:[%s3488_s17 + $0xf80] sm:$0xff] }
 0x197   : > { %2704 = vmatpush1.bf16.msra.mxu0 %v2703_v32  ;;  %v863_v32 = vld [vmem:[%s3488_s17 + $0xfb8] sm:$0xff] }
 0x198   : > { %2768 = vmatpush1.bf16.msra.mxu1 %v2767_v27  ;;  %2706 = vmatprep.subr.bf16.mxu0 %v2705_v47  ;;  %v2723_v27 = vpack.c.bf16 %v794_v43, %v792_v41  ;;  %v2787_v47 = vpack.c.bf16 %v858_v15, %v856_v25  ;;  %v2789_v53 = vpack.c.bf16 %v863_v32, %v861_v44  ;;  %v1710_v41 = vld [vmem:[#allocation3 + $0x2] sm:$0x1]  ;;  %v1708_v43 = vld [vmem:[#allocation3] sm:$0x1] }
 0x199   : > { %2770 = vmatprep.subr.bf16.mxu1 %v2769_v52  ;;  %v860_v52 = vld [vmem:[%s3488_s17 + $0xfa0] sm:$0xff] }
 0x19b   : > { %2708 = vmatpush1.bf16.msra.mxu0 %v2707_v57  ;;  %v867_v57 = vld [vmem:[%s3488_s17 + $0xfd8] sm:$0xff] }
 0x19c   : > { %2772 = vmatpush1.bf16.msra.mxu1 %v2771_v23  ;;  %2710 = vmatprep.subr.bf16.mxu0 %v2709_v58  ;;  %v2727_v23 = vpack.c.bf16 %v798_v45, %v796_v49  ;;  %v2791_v58 = vpack.c.bf16 %v862_v22, %v860_v52  ;;  %v2793_v19 = vpack.c.bf16 %v867_v57, %v865_v56  ;;  %v1712_v57 = vld [vmem:[#allocation3 + $0x4] sm:$0x1] }
 0x19d   : > { %2774 = vmatprep.subr.bf16.mxu1 %v2773_v63  ;;  %v864_v63 = vld [vmem:[%s3488_s17 + $0xfc0] sm:$0xff] }
 0x19f   : > { %2712 = vmatpush1.bf16.msra.mxu0 %v2711_v5  ;;  %v871_v5 = vld [vmem:[%s3488_s17 + $0xff8] sm:$0xff] }
 0x1a0   : > { %2776 = vmatpush1.bf16.msra.mxu1 %v2775_v7  ;;  %2714 = vmatprep.subr.bf16.mxu0 %v2713_v8  ;;  %v2731_v7 = vpack.c.bf16 %v802_v62, %v800_v60  ;;  %v2795_v8 = vpack.c.bf16 %v866_v0, %v864_v63 }
 0x1a1   : > { %2778 = vmatprep.subr.bf16.mxu1 %v2777_v17  ;;  %v2797_v17 = vpack.c.bf16 %v871_v5, %v869_v4  ;;  %v1714_v5 = vld [vmem:[#allocation3 + $0x6] sm:$0x1] }
 0x1a3   : > { %2716 = vmatpush1.bf16.msra.mxu0 %v2715_v31  ;;  %v1562_v31 = vunpack.c.l.s4 %v3227_v30 }
 0x1a4   : > { %2780 = vmatpush1.bf16.msra.mxu1 %v2779_v33  ;;  %2718 = vmatprep.subr.bf16.mxu0 %v2717_v10 }
 0x1a5   : > { %2782 = vmatprep.subr.bf16.mxu1 %v2781_v36  ;;  %v1563_v33 = vunpack.c.0.s8 %v1562_v31  ;;  %v1540_v31 = vld [vmem:[#allocation2 + $0x8] sm:$0x3] }
 0x1a7   : > { %2720 = vmatpush1.bf16.msra.mxu0 %v2719_v39  ;;  %v4166_v10 = vsub.s32 %v1563_v33, %v3601_v61 }
 0x1a8   : > { %2784 = vmatpush1.bf16.msra.mxu1 %v2783_v6  ;;  %2722 = vmatprep.subr.bf16.mxu0 %v2721_v40 }
 0x1a9   : > { %2786 = vmatprep.subr.bf16.mxu1 %v2785_v42 }
 0x1ab   : > { %2724 = vmatpush1.bf16.msra.mxu0 %v2723_v27 }
 0x1ac   : > { %2788 = vmatpush1.bf16.msra.mxu1 %v2787_v47  ;;  %2726 = vmatprep.subr.bf16.mxu0 %v2725_v14 }
 0x1ad   : > { %2790 = vmatprep.subr.bf16.mxu1 %v2789_v53 }
 0x1af   : > { %2728 = vmatpush1.bf16.msra.mxu0 %v2727_v23 }
 0x1b0   : > { %2792 = vmatpush1.bf16.msra.mxu1 %v2791_v58  ;;  %2730 = vmatprep.subr.bf16.mxu0 %v2729_v59  ;;  %v1538_v58 = vld [vmem:[#allocation2 + $0x4] sm:$0x3] }
 0x1b1   : > { %2794 = vmatprep.subr.bf16.mxu1 %v2793_v19  ;;  %v1539_v19 = vld [vmem:[#allocation2 + $0x6] sm:$0x3] }
 0x1b3   : > { %2732 = vmatpush1.bf16.msra.mxu0 %v2731_v7 }
 0x1b4   : > { %2796 = vmatpush1.bf16.msra.mxu1 %v2795_v8  ;;  %2734 = vmatprep.subr.bf16.mxu0 %v2733_v9 }
 0x1b5   : > { %2798 = vmatprep.subr.bf16.mxu1 %v2797_v17 }
 0x1b7   : > { %2736 = vmatpush1.bf16.msra.mxu0 %v2735_v26 }
 0x1b8   : > { %2800 = vmatpush1.bf16.msra.mxu1 %v2799_v28 }
 0x1ba   : > { %1448 = vmatmul.mubr.f32.vlgmr.msra.gmra.mrb[6].mxu0 %v3986_v11 }
 0x1bb   : > { %1530 = vmatmul.mubr.f32.vlgmr.msra.gmra.mrb[6].mxu1 %v3996_v20  ;;  %v1537_v20 = vld [vmem:[#allocation2 + $0x2] sm:$0x3] }
 0x1cd   : > { %v957_v34 = vpop.f32.mrb[0].mxu0 }
 0x1ce   : > { %v1039_v35 = vpop.f32.mrb[0].mxu1  ;;  %v959_v3 = vpop.f32.mrb[1].mxu0 }
 0x1cf   : > { %v1560_v36 = vcombine.low %v957_v34, %v959_v3  ;;  %v1041_v50 = vpop.f32.mrb[1].mxu1 }
 0x1d0   : > { %v1575_v37 = vcombine.low %v1039_v35, %v1041_v50  ;;  %v1541_v35 = vld [vmem:[#allocation2 + $0xa] sm:$0x3] }
 0x1d1   : > { %v1567_v21 = vrot.slane %v1560_v36, %v4166_v10 }
 0x1d2   : > { %v1582_v38 = vrot.slane %v1575_v37, %v4166_v10  ;;  %v1731_v25 = vpop.xlane.xlu1 %1730 }
 0x1d3   : > { %v1574_v11 = vrot.slane %v1567_v21, %v4166_v10  ;;  %v1759_v42 = vadd.f32 %v1731_v25, %v1710_v41 }
 0x1d4   : > { %v1589_v61 = vrot.slane %v1582_v38, %v4166_v10  ;;  %v1721_v15 = vpop.xlane.xlu0 %1720 }
 0x1d5   : > { %v1688_v6 = vadd.f32 %v1574_v11, %v1536_v29  ;;  %v1757_v48 = vadd.f32 %v1721_v15, %v1708_v43  ;;  %1768 = vst.msk [vmem:[#allocation3 + $0x2] sm:$0x1] %vm1765_vm4, %v1759_v42  ;;  %v1543_v43 = vld [vmem:[#allocation2 + $0xe] sm:$0x3] }
 0x1d6   : > { %v1689_v40 = vadd.f32 %v1589_v61, %v1537_v20  ;;  %v1736_v44 = vpop.xlane.xlu1 %1735 }
 0x1d7   : > { %1700 = vst.msk [vmem:[#allocation2] sm:$0x3] %vm4172_vm3, %v1688_v6  ;;  %v1760_v32 = vadd.f32 %v1736_v44, %v1711_v24  ;;  %v1542_v6 = vld [vmem:[#allocation2 + $0xc] sm:$0x3] }
 0x1d8   : > { %1701 = vst.msk [vmem:[#allocation2 + $0x2] sm:$0x3] %vm4172_vm3, %v1689_v40  ;;  %v1726_v27 = vpop.xlane.xlu0 %1725 }
 0x1d9   : > { %1766 = vst.msk [vmem:[#allocation3] sm:$0x1] %vm1765_vm4, %v1757_v48  ;;  %v1758_v47 = vadd.f32 %v1726_v27, %v1709_v51  ;;  %1769 = vst.msk [vmem:[#allocation3 + $0x3] sm:$0x1] %vm1765_vm4, %v1760_v32  ;;  %v3228_v51 = vmov (!%p2245_p1), 0  }
 0x1da   : > { %2975 = vset.pattern.permute.xlu1 (!%p2245_p1), %v3228_v51  ;;  %2974 = vset.pattern.permute.xlu0 (!%p2245_p1), %v3228_v51  ;;  %v1902_v51 = vld [vmem:[#allocation9 + $0x60] sm:$0xff] (!%p2245_p1) }
 0x1db   : > { %1767 = vst.msk [vmem:[#allocation3 + $0x1] sm:$0x1] %vm1765_vm4, %v1758_v47 }
 0x1dc   : > { %v1741_v23 = vpop.xlane.xlu0 %1740  ;;  %v1788_v48 = vld [vmem:[#allocation3 + $0x2] sm:$0x1] (!%p2245_p1) }
 0x1dd   : > { %v1761_v62 = vadd.f32 %v1741_v23, %v1712_v57  ;;  %v1796_v44 = vmax.f32 (!%p2245_p1), %v1788_v48, 1e-09  ;;  %v1891_v23 = vld [vmem:[#allocation9 + $0x8] sm:$0xff] (!%p2245_p1) }
 0x1de   : > { %v1919_v48 = vld [vmem:[#allocation9 + $0xe8] sm:$0xff] (!%p2245_p1) }
 0x1df   : > { %1770 = vst.msk [vmem:[#allocation3 + $0x4] sm:$0x1] %vm1765_vm4, %v1761_v62  ;;  %2976 = vrcp.f32 (!%p2245_p1), %v1796_v44  ;;  %v1903_v44 = vld [vmem:[#allocation9 + $0x68] sm:$0xff] (!%p2245_p1) }
 0x1e0   : > { %v1786_v24 = vld [vmem:[#allocation3] sm:$0x1] (!%p2245_p1)  ;;  %v1789_v27 = vld [vmem:[#allocation3 + $0x3] sm:$0x1] (!%p2245_p1) }
 0x1e1   : > { %v1794_v32 = vmax.f32 (!%p2245_p1), %v1786_v24, 1e-09  ;;  %v1797_v47 = vmax.f32 (!%p2245_p1), %v1789_v27, 1e-09  ;;  %v1920_v27 = vld [vmem:[#allocation9 + $0xf0] sm:$0xff] (!%p2245_p1) }
 0x1e3   : > { %2978 = vrcp.f32 (!%p2245_p1), %v1794_v32  ;;  %v2827_v32 = vpack.c.bf16 (!%p2245_p1), %v1903_v44, %v1902_v51 }
 0x1e4   : > { %2980 = vrcp.f32 (!%p2245_p1), %v1797_v47  ;;  %v1921_v47 = vld [vmem:[#allocation9 + $0xf8] sm:$0xff] (!%p2245_p1) }
 0x1e6   : > { %v1746_v56 = vpop.xlane.xlu1 %1745 }
 0x1e7   : > { %v1762_v60 = vadd.f32 %v1746_v56, %v1713_v55  ;;  %v1890_v55 = vld [vmem:[#allocation9] sm:$0xff] (!%p2245_p1) }
 0x1e8   : > { %v2803_v62 = vpack.c.bf16 (!%p2245_p1), %v1891_v23, %v1890_v55 }
 0x1e9   : > { %1771 = vst.msk [vmem:[#allocation3 + $0x5] sm:$0x1] %vm1765_vm4, %v1762_v60 }
 0x1ef   : > { %v1756_v4 = vpop.xlane.xlu1 %1755  ;;  %v1751_v7 = vpop.xlane.xlu0 %1750 }
 0x1f0   : > { %v1764_v9 = vadd.f32 %v1756_v4, %v1715_v2  ;;  %v1763_v13 = vadd.f32 %v1751_v7, %v1714_v5  ;;  %v1893_v2 = vld [vmem:[#allocation9 + $0x18] sm:$0xff] (!%p2245_p1)  ;;  %v2977_v4 = vpop.eup (!%p2245_p1), %2976 }
 0x1f1   : > { %v2979_v7 = vpop.eup (!%p2245_p1), %2978  ;;  %1830 = vperm.xlu1 (!%p2245_p1), %2975, %v2977_v4  }
 0x1f2   : > { %1773 = vst.msk [vmem:[#allocation3 + $0x7] sm:$0x1] %vm1765_vm4, %v1764_v9  ;;  %1772 = vst.msk [vmem:[#allocation3 + $0x6] sm:$0x1] %vm1765_vm4, %v1763_v13  ;;  %1812 = vperm.xlu0 (!%p2245_p1), %2974, %v2979_v7   ;;  %v1910_v9 = vld [vmem:[#allocation9 + $0xa0] sm:$0xff] (!%p2245_p1)  ;;  %v1911_v13 = vld [vmem:[#allocation9 + $0xa8] sm:$0xff] (!%p2245_p1) }
 0x1f9   : > { %v1792_v60 = vld [vmem:[#allocation3 + $0x6] sm:$0x1] (!%p2245_p1) }
 0x20d   : > { %v1121_v14 = vpop.f32.mrb[2].mxu0 }
 0x20e   : > { %v1203_v49 = vpop.f32.mrb[2].mxu1  ;;  %v1123_v45 = vpop.f32.mrb[3].mxu0 }
 0x20f   : > { %v1590_v52 = vcombine.low %v1121_v14, %v1123_v45  ;;  %v1205_v53 = vpop.f32.mrb[3].mxu1  ;;  %v1787_v14 = vld [vmem:[#allocation3 + $0x1] sm:$0x1] (!%p2245_p1) }
 0x210   : > { %v1605_v22 = vcombine.low %v1203_v49, %v1205_v53  ;;  %v1791_v49 = vld [vmem:[#allocation3 + $0x5] sm:$0x1] (!%p2245_p1)  ;;  %v1795_v45 = vmax.f32 (!%p2245_p1), %v1787_v14, 1e-09  ;;  %v1906_v53 = vld [vmem:[#allocation9 + $0x80] sm:$0xff] (!%p2245_p1)  ;;  %v1904_v14 = vld [vmem:[#allocation9 + $0x70] sm:$0xff] (!%p2245_p1) }
 0x211   : > { %v1597_v54 = vrot.slane %v1590_v52, %v4166_v10  ;;  %v1790_v52 = vld [vmem:[#allocation3 + $0x4] sm:$0x1] (!%p2245_p1)  ;;  %v1799_v39 = vmax.f32 (!%p2245_p1), %v1791_v49, 1e-09  ;;  %v2829_v49 = vpack.c.bf16 (!%p2245_p1), %v1921_v47, %v1920_v27 }
 0x212   : > { %v1612_v59 = vrot.slane %v1605_v22, %v4166_v10  ;;  %v1793_v22 = vld [vmem:[#allocation3 + $0x7] sm:$0x1] (!%p2245_p1)  ;;  %2982 = vrcp.f32 (!%p2245_p1), %v1795_v45  ;;  %v1798_v56 = vmax.f32 (!%p2245_p1), %v1790_v52, 1e-09 }
 0x213   : > { %v1604_v63 = vrot.slane %v1597_v54, %v4166_v10  ;;  %v1907_v54 = vld [vmem:[#allocation9 + $0x88] sm:$0xff] (!%p2245_p1)  ;;  %2984 = vrcp.f32 (!%p2245_p1), %v1799_v39  ;;  %v1905_v45 = vld [vmem:[#allocation9 + $0x78] sm:$0xff] (!%p2245_p1) }
 0x214   : > { %v1619_v0 = vrot.slane %v1612_v59, %v4166_v10  ;;  %v2801_v57 = vpack.c.bf16 (!%p2245_p1), %v1907_v54, %v1906_v53  ;;  %v1909_v59 = vld [vmem:[#allocation9 + $0x98] sm:$0xff] (!%p2245_p1)  ;;  %2986 = vrcp.f32 (!%p2245_p1), %v1798_v56  ;;  %v2831_v52 = vpack.c.bf16 (!%p2245_p1), %v1905_v45, %v1904_v14 }
 0x215   : > { %v1690_v1 = vadd.f32 %v1604_v63, %v1538_v58  ;;  %v1908_v58 = vld [vmem:[#allocation9 + $0x90] sm:$0xff] (!%p2245_p1) }
 0x216   : > { %v1691_v8 = vadd.f32 %v1619_v0, %v1539_v19  ;;  %v2805_v63 = vpack.c.bf16 (!%p2245_p1), %v1909_v59, %v1908_v58  ;;  %2802 = vmatprep.subr.bf16.mxu0 (!%p2245_p1), %v2801_v57  ;;  %v1801_v19 = vmax.f32 (!%p2245_p1), %v1793_v22, 1e-09  ;;  %v1800_v0 = vmax.f32 (!%p2245_p1), %v1792_v60, 1e-09  ;;  %v1779_v57 = vld [vmem:[#allocation2 + $0x2] sm:$0x3] (!%p2245_p1) }
 0x217   : > { %1702 = vst.msk [vmem:[#allocation2 + $0x4] sm:$0x3] %vm4172_vm3, %v1690_v1  ;;  %2804 = vmatpush3.bf16.msra.mxu0 (!%p2245_p1), %v2803_v62  ;;  %v1892_v1 = vld [vmem:[#allocation9 + $0x10] sm:$0xff] (!%p2245_p1)  ;;  %v1778_v62 = vld [vmem:[#allocation2] sm:$0x3] (!%p2245_p1) }
 0x218   : > { %1703 = vst.msk [vmem:[#allocation2 + $0x6] sm:$0x3] %vm4172_vm3, %v1691_v8  ;;  %2806 = vmatprep.subr.bf16.mxu0 (!%p2245_p1), %v2805_v63  ;;  %2988 = vrcp.f32 (!%p2245_p1), %v1801_v19  ;;  %v2807_v5 = vpack.c.bf16 (!%p2245_p1), %v1893_v2, %v1892_v1  ;;  %v2981_v8 = vpop.eup (!%p2245_p1), %2980 }
 0x219   : > { %2990 = vrcp.f32 (!%p2245_p1), %v1800_v0  ;;  %1839 = vperm.xlu1 (!%p2245_p1), %2975, %v2981_v8  }
 0x21b   : > { %2808 = vmatpush3.bf16.msra.mxu0 (!%p2245_p1), %v2807_v5 }
 0x21e   : > { %v1780_v60 = vld [vmem:[#allocation2 + $0x4] sm:$0x3] (!%p2245_p1) }
 0x21f   : > { %v1781_v54 = vld [vmem:[#allocation2 + $0x6] sm:$0x3] (!%p2245_p1) }
 0x24d   : > { %v1285_v16 = vpop.f32.mrb[4].mxu0 }
 0x24e   : > { %v1367_v17 = vpop.f32.mrb[4].mxu1  ;;  %v1287_v46 = vpop.f32.mrb[5].mxu0 }
 0x24f   : > { %v1620_v18 = vcombine.low %v1285_v16, %v1287_v46  ;;  %v1369_v26 = vpop.f32.mrb[5].mxu1  ;;  %v2983_v16 = vpop.eup (!%p2245_p1), %2982  ;;  %v1894_v46 = vld [vmem:[#allocation9 + $0x20] sm:$0xff] (!%p2245_p1) }
 0x250   : > { %v1635_v28 = vcombine.low %v1367_v17, %v1369_v26  ;;  %v2809_v17 = vpack.c.bf16 (!%p2245_p1), %v1911_v13, %v1910_v9  ;;  %1821 = vperm.xlu0 (!%p2245_p1), %2974, %v2983_v16  }
 0x251   : > { %v1627_v30 = vrot.slane %v1620_v18, %v4166_v10  ;;  %v1895_v18 = vld [vmem:[#allocation9 + $0x28] sm:$0xff] (!%p2245_p1) }
 0x252   : > { %v1642_v33 = vrot.slane %v1635_v28, %v4166_v10  ;;  %v2811_v26 = vpack.c.bf16 (!%p2245_p1), %v1895_v18, %v1894_v46  ;;  %2810 = vmatprep.subr.bf16.mxu0 (!%p2245_p1), %v2809_v17  ;;  %v2985_v28 = vpop.eup (!%p2245_p1), %2984 }
 0x253   : > { %v1634_v34 = vrot.slane %v1627_v30, %v4166_v10  ;;  %v1912_v30 = vld [vmem:[#allocation9 + $0xb0] sm:$0xff] (!%p2245_p1)  ;;  %1857 = vperm.xlu1 (!%p2245_p1), %2975, %v2985_v28  }
 0x254   : > { %v1649_v3 = vrot.slane %v1642_v33, %v4166_v10  ;;  %2812 = vmatpush3.bf16.msra.mxu0 (!%p2245_p1), %v2811_v26  ;;  %v2987_v33 = vpop.eup (!%p2245_p1), %2986 }
 0x255   : > { %v1692_v36 = vadd.f32 %v1634_v34, %v1540_v31  ;;  %v1913_v31 = vld [vmem:[#allocation9 + $0xb8] sm:$0xff] (!%p2245_p1)  ;;  %1848 = vperm.xlu0 (!%p2245_p1), %2974, %v2987_v33  }
 0x256   : > { %v1693_v50 = vadd.f32 %v1649_v3, %v1541_v35  ;;  %v2813_v34 = vpack.c.bf16 (!%p2245_p1), %v1913_v31, %v1912_v30  ;;  %v1896_v35 = vld [vmem:[#allocation9 + $0x30] sm:$0xff] (!%p2245_p1)  ;;  %v1897_v3 = vld [vmem:[#allocation9 + $0x38] sm:$0xff] (!%p2245_p1) }
 0x257   : > { %1704 = vst.msk [vmem:[#allocation2 + $0x8] sm:$0x3] %vm4172_vm3, %v1692_v36  ;;  %v2815_v36 = vpack.c.bf16 (!%p2245_p1), %v1897_v3, %v1896_v35 }
 0x258   : > { %1705 = vst.msk [vmem:[#allocation2 + $0xa] sm:$0x3] %vm4172_vm3, %v1693_v50  ;;  %2814 = vmatprep.subr.bf16.mxu0 (!%p2245_p1), %v2813_v34  ;;  %v2989_v50 = vpop.eup (!%p2245_p1), %2988 }
 0x259   : > { %2816 = vmatpush3.bf16.msra.mxu0 (!%p2245_p1), %v2815_v36  ;;  %1875 = vperm.xlu1 (!%p2245_p1), %2975, %v2989_v50  }
 0x25e   : > { %v1782_v5 = vld [vmem:[#allocation2 + $0x8] sm:$0x3] (!%p2245_p1) }
 0x25f   : > { %v1783_v1 = vld [vmem:[#allocation2 + $0xa] sm:$0x3] (!%p2245_p1) }
 0x270   : > { %v1831_v53 = vpop.permute.xlu1 (!%p2245_p1), %1830 }
 0x271   : > { %v1813_v39 = vpop.permute.xlu0 (!%p2245_p1), %1812  ;;  %v1836_v23 = vrot.slane (!%p2245_p1), %v1831_v53, %v3669_v12 }
 0x272   : > { %v1818_v58 = vrot.slane (!%p2245_p1), %v1813_v39, %v3669_v12 }
 0x273   : > { %v1884_v7 = vmul.f32 (!%p2245_p1), %v1836_v23, %v1780_v60 }
 0x274   : > { %v1882_v8 = vmul.f32 (!%p2245_p1), %v1818_v58, %v1778_v62 }
 0x28d   : > { %v1449_v37 = vpop.f32.mrb[6].mxu0 }
 0x28e   : > { %v1531_v21 = vpop.f32.mrb[6].mxu1  ;;  %v1451_v29 = vpop.f32.mrb[7].mxu0 }
 0x28f   : > { %v1650_v38 = vcombine.low %v1449_v37, %v1451_v29  ;;  %v1533_v11 = vpop.f32.mrb[7].mxu1  ;;  %v1914_v37 = vld [vmem:[#allocation9 + $0xc0] sm:$0xff] (!%p2245_p1)  ;;  %v2991_v29 = vpop.eup (!%p2245_p1), %2990 }
 0x290   : > { %v1665_v20 = vcombine.low %v1531_v21, %v1533_v11  ;;  %v1915_v21 = vld [vmem:[#allocation9 + $0xc8] sm:$0xff] (!%p2245_p1)  ;;  %v1898_v11 = vld [vmem:[#allocation9 + $0x40] sm:$0xff] (!%p2245_p1)  ;;  %1866 = vperm.xlu0 (!%p2245_p1), %2974, %v2991_v29  }
 0x291   : > { %v1657_v61 = vrot.slane %v1650_v38, %v4166_v10  ;;  %v2817_v38 = vpack.c.bf16 (!%p2245_p1), %v1915_v21, %v1914_v37 }
 0x292   : > { %v1672_v40 = vrot.slane %v1665_v20, %v4166_v10  ;;  %1777 = sbr.rel (%p2245_p1) target bundleno = 1017 (0x3f9), region = 60  ;;  %v1899_v20 = vld [vmem:[#allocation9 + $0x48] sm:$0xff] (!%p2245_p1) }
 0x293   : > { %v1664_v41 = vrot.slane %v1657_v61, %v4166_v10  ;;  %v2819_v61 = vpack.c.bf16 (!%p2245_p1), %v1899_v20, %v1898_v11  ;;  %2818 = vmatprep.subr.bf16.mxu0 (!%p2245_p1), %v2817_v38 }
 0x294   : > { %v1679_v25 = vrot.slane %v1672_v40, %v4166_v10  ;;  %v1917_v40 = vld [vmem:[#allocation9 + $0xd8] sm:$0xff] (!%p2245_p1) }
 0x295   : > { %v1694_v42 = vadd.f32 %v1664_v41, %v1542_v6  ;;  %2820 = vmatpush3.bf16.msra.mxu0 (!%p2245_p1), %v2819_v61  ;;  %v1916_v6 = vld [vmem:[#allocation9 + $0xd0] sm:$0xff] (!%p2245_p1) }
 0x296   : > { %v1695_v15 = vadd.f32 %v1679_v25, %v1543_v43  ;;  %v2821_v41 = vpack.c.bf16 (!%p2245_p1), %v1917_v40, %v1916_v6  ;;  %v1900_v43 = vld [vmem:[#allocation9 + $0x50] sm:$0xff] (!%p2245_p1)  ;;  %v1901_v25 = vld [vmem:[#allocation9 + $0x58] sm:$0xff] (!%p2245_p1) }
 0x297   : > { %1706 = vst.msk [vmem:[#allocation2 + $0xc] sm:$0x3] %vm4172_vm3, %v1694_v42  ;;  %v2823_v42 = vpack.c.bf16 (!%p2245_p1), %v1901_v25, %v1900_v43 }
 0x298   : > { %1707 = vst.msk [vmem:[#allocation2 + $0xe] sm:$0x3] %vm4172_vm3, %v1695_v15  ;;  %2822 = vmatprep.subr.bf16.mxu0 (!%p2245_p1), %v2821_v41  ;;  %v1918_v15 = vld [vmem:[#allocation9 + $0xe0] sm:$0xff] (!%p2245_p1)  ;;  %v1840_v22 = vpop.permute.xlu1 (!%p2245_p1), %1839 }
 0x299   : > { %2824 = vmatpush3.bf16.msra.mxu0 %v2823_v42  ;;  %v2825_v24 = vpack.c.bf16 %v1919_v48, %v1918_v15  ;;  %v1845_v55 = vrot.slane %v1840_v22, %v3669_v12  ;;  %v2246_v15 = vld [vmem:[#allocation10] ss:$0 sm:$0xff] }
 0x29b   : > { %2826 = vmatprep.subr.bf16.mxu0 %v2825_v24  ;;  %v1885_v63 = vmul.f32 %v1845_v55, %v1781_v54 }
 0x29d   : > { %2828 = vmatpush3.bf16.msra.mxu0 %v2827_v32  ;;  %v1938_v13 = vcombine.low %v1884_v7, %v1885_v63 }
 0x29e   : > { %2830 = vmatprep.subr.bf16.mxu0 %v2829_v49  ;;  %v1784_v31 = vld [vmem:[#allocation2 + $0xc] sm:$0x3] }
 0x29f   : > { %v1785_v26 = vld [vmem:[#allocation2 + $0xe] sm:$0x3]  ;;  %v1954_v50 = vrot.slane %v1938_v13, %v4166_v10 }
 0x2a1   : > { %2832 = vmatpush3.bf16.msra.mxu0 %v2831_v52 }
 0x2cf   : > { %v1822_v56 = vpop.permute.xlu0 %1821 }
 0x2d0   : > { %v1827_v59 = vrot.slane %v1822_v56, %v3669_v12 }
 0x2d2   : > { %v1883_v19 = vmul.f32 %v1827_v59, %v1779_v57  ;;  %v1858_v0 = vpop.permute.xlu1 %1857 }
 0x2d3   : > { %v1863_v2 = vrot.slane %v1858_v0, %v3669_v12 }
 0x2d4   : > { %v1849_v4 = vpop.permute.xlu0 %1848  ;;  %v1937_v16 = vcombine.low %v1882_v8, %v1883_v19 }
 0x2d5   : > { %v1854_v9 = vrot.slane %v1849_v4, %v3669_v12  ;;  %v1887_v17 = vmul.f32 %v1863_v2, %v1783_v1 }
 0x2d6   : > { %v1947_v36 = vrot.slane %v1937_v16, %v4166_v10 }
 0x2d7   : > { %v1886_v46 = vmul.f32 %v1854_v9, %v1782_v5 }
 0x2d8   : > { %v1876_v18 = vpop.permute.xlu1 %1875  ;;  %v1970_v38 = vcombine.high %v1947_v36, %v1954_v50  ;;  %v1969_v11 = vcombine.low %v1947_v36, %v1954_v50 }
 0x2d9   : > { %v1881_v28 = vrot.slane %v1876_v18, %v3669_v12  ;;  %v1939_v35 = vcombine.low %v1886_v46, %v1887_v17 }
 0x2da   : > { %v1986_v6 = vrot.slane %v1970_v38, %v4166_v10  ;;  %v1979_v40 = vrot.slane %v1969_v11, %v4166_v10 }
 0x2db   : > { %v1889_v34 = vmul.f32 %v1881_v28, %v1785_v26  ;;  %v1961_v29 = vrot.slane %v1939_v35, %v4166_v10 }
 0x30f   : > { %v1867_v30 = vpop.permute.xlu0 %1866 }
 0x310   : > { %v1872_v33 = vrot.slane %v1867_v30, %v3669_v12 }
 0x312   : > { %v1888_v3 = vmul.f32 %v1872_v33, %v1784_v31 }
 0x314   : > { %v1940_v37 = vcombine.low %v1888_v3, %v1889_v34 }
 0x316   : > { %v1968_v21 = vrot.slane %v1940_v37, %v4166_v10 }
 0x318   : > { %v1972_v20 = vcombine.high %v1961_v29, %v1968_v21  ;;  %v1971_v61 = vcombine.low %v1961_v29, %v1968_v21 }
 0x31a   : > { %v2000_v12 = vrot.slane %v1972_v20, %v4166_v10  ;;  %v1993_v41 = vrot.slane %v1971_v61, %v4166_v10 }
 0x31c   : > { %v2002_v43 = vcombine.low %v1986_v6, %v2000_v12  ;;  %v2001_v25 = vcombine.low %v1979_v40, %v1993_v41 }
 0x31e   : > { %2069 = vmatprep.mubr.f32.mxu0 %v2002_v43 }
 0x31f   : > { %2070 = vmatmul.mubr.f32.vlgmr.msra.gmra.mrb[0].mxu0 %v2001_v25 }
 0x3f2   : > { %v2286_v42 = vpop.f32.mrb[0].mxu0 }
 0x3f3   : > { %v2287_v48 = vpop.f32.mrb[1].mxu0 }
 0x3f4   : > { %v2288_v24 = vadd.f32 %v2287_v48, %v2286_v42 }
 0x3f6   : > { %v2072_v51 = vadd.f32 %v2288_v24, %v2246_v15 }
 0x3f8   : > { %2075 = vst [vmem:[%s330_s8] sm:$0xff] %v2072_v51 }
 0x3f9 PF: > { %s2248_s21 = sshll.u32 %s3198_s22, 7  ;;  %s4341_s15 = sld [smem:[#allocation31_spill]] }
 0x3fa   : > { %s2090_s13 = sshll.u32 %s330_s8, 4  ;;  %s2077_s10 = scalar_lea.sflag [#allocation6], %s328_s18  ;;  %s2091_s13 = int_to_ptr.vmem [resolvable:$true] %s2090_s13 }
 0x3fb   : > { %s3076_s30 = scalar_lea.vmem %s2091_s13, 128  ;;  %p4343_p8 = scmp.ne.s32.totalorder %s4322_s11, 0 }
 0x3fc   : > { %p3077_p2 = scmp.ne.s32.totalorder %s2091_s13, %s3076_s30  ;;  %s3229_s14 = smov [#allocation12]  }
 0x3fd   : > { %s3080_s9 = sshll.u32 %s3229_s14, 4  ;;  %s3081_s9 = int_to_ptr.vmem [resolvable:$false] %s3080_s9 }
 0x3fe   : > { %p3078_p6 = pnand %p3077_p2, %p4343_p8  ;;  %s3082_s28 = scalar_lea.vmem %s3081_s9, 256 }
 0x3ff   : > { %s4342_s3 = smov %s4341_s15  ;;  %s4236_s4 = scalar_lea.hbm %s4341_s15, %s2248_s21 }
 0x400   : > { %p3079_p11 = pneg %p3078_p6  ;;  %p3083_p3 = scmp.lt.s32.totalorder %s2091_s13, %s3081_s9 }
 0x401   : > { %p3084_p12 = scmp.lt.s32.totalorder %s3082_s28, %s3076_s30 }
 0x403   : > { %p3085_p7 = por %p3084_p12, %p3083_p3 }
 0x405   : > { %p3086_p4 = pnand %p3085_p7, %p3079_p11 }
 0x407   : > { %3089 = shalt.err (!%p3086_p4)
}
 0x408   : > { %s3090_s22 = scalar_lea.hbm %s4236_s4, 128  ;;  %s3094_s17 = scalar_lea.hbm %s4342_s3, 256 }
 0x409   : > { %p3091_p9 = scmp.ne.s32.totalorder %s4236_s4, %s3090_s22  ;;  %p3095_p13 = scmp.lt.u32.totalorder %s4236_s4, %s4342_s3 }
 0x40a   : > { %p3096_p0 = scmp.lt.u32.totalorder %s3094_s17, %s3090_s22  ;;  %p3098_p2 = scmp.lt.u32.totalorder %s3090_s22, %s4236_s4 }
 0x40b   : > { %p3092_p5 = pnand %p3091_p9, %p4343_p8 }
 0x40c   : > { %p3097_p1 = por %p3096_p0, %p3095_p13 }
 0x40d   : > { %p3093_p10 = pneg %p3092_p5 }
 0x40e   : > { %p3099_p6 = por %p3098_p2, %p3097_p1 }
 0x410   : > { %p3100_p11 = pnand %p3099_p6, %p3093_p10 }
 0x412   : > { %3103 = shalt.err (!%p3100_p11)
}
 0x413   : > { %2852 = dma.vmem_to_hbm [thread:$0]  (%p4343_p8), %s2091_s13, 128, %s4236_s4, %s2077_s10  }
 0x414 PF: > { %s4344_s7 = sld [smem:[#allocation21_spill]]  ;;  %s4345_s12 = sld [smem:[#allocation27_spill]] }
 0x415   : > { %p2869_p3 = scmp.ge.s32.totalorder %s3210_s25, 2 }
 0x41a   : > { %s2102_s18 = sand.u32 1, %s4344_s7   ;;  %p4346_p12 = scmp.ne.s32.totalorder %s4345_s12, 0 }
 0x41b   : > { %s2103_s5 = scalar_lea.sflag [#allocation6], %s2102_s18 }
 0x41c   : > { %p2862_p7 = pnand %p2869_p3, %p4346_p12 }
 0x41e   : > { %3165 = dma.done.wait (!%p2862_p7), %s2103_s5, 128  }
 0x41f   : > { %3167 = vsyncadd (!%p2862_p7), %s2103_s5, 4294967168  ;;  %s24_s25 = sadd.s32 1, %s3210_s25   ;;  %s4347_s8 = sld [smem:[#allocation22_spill]] }
 0x420   : > { %p21_p4 = scmp.ge.s32.totalorder %s24_s25, 6   ;;  %s4348_s17 = sld [smem:[#allocation25_spill]] }
 0x421   : > { %s4349_s11 = sld [smem:[#allocation26_spill]]  ;;  %s4350_s26 = sld [smem:[#allocation23_spill]] }
 0x422   : > { %s4351_s27 = sld [smem:[#allocation24_spill]]  ;;  %s4352_s15 = smov %s3174_s16 }
 0x423   : > { %s4354_s18 = smov %s3186_s19  ;;  %s4355_s19 = smov %s3190_s20 }
 0x424   : > { %s4357_s21 = smov %s3202_s23  ;;  %s4358_s22 = smov %s3206_s24 }
 0x425   : > { %s4353_s16 = smov %s4347_s8  ;;  %23 = sbr.rel (!%p21_p4) target bundleno = 17 (0x11), region = 115 }
 0x427   : > { %s4356_s20 = smov %s4349_s11  ;;  %s4359_s23 = smov %s4350_s26 }
 0x428   : > { %s4360_s24 = smov %s4351_s27 }
 0x42c   :  { %2108 = vsyncpa [#allocation5], 1 }
 0x42d   :  { %2110 = vsyncpa [#allocation5 + $0x1], 1 }
 0x42e   :  { %2111 = vsyncpa [#allocation8], 1 }
 0x42f   :  { %2113 = vsyncpa [#allocation8 + $0x1], 1 }
 0x430   :  { %2114 = vsyncpa [#allocation11], 1 }
 0x431   :  { %2115 = vsyncpa [#allocation6], 1 }
 0x432   :  { %2117 = vsyncpa [#allocation6 + $0x1], 1 }

</bundles_post_ra>
